<compile_context>
chip_gen: v7x
topology: tpu7x:2x2x1
jax: 0.10.0
libtpu: 0.0.40
codegen_flags: <defaults>
</compile_context>

<pallas_src>
import functools

import jax
import jax.numpy as jnp
from jax import lax
from jax.experimental import pallas as pl
from jax.experimental.pallas import tpu as pltpu


def attention_decoder_kernel(
    emb_ref, hs_ref, h0_ref,
    w_ihT_ref, w_hhT_ref, b_ih_ref, b_hh_ref,
    w_o1T_ref, w_o2T_ref, b_out_ref,
    logits_ref, state_ref, attn_ref,
    *, hidden_dim, t_dec, bb,
):
    H = hidden_dim
    w_ihT = w_ihT_ref[...]       # (E, 3H)
    w_hhT = w_hhT_ref[...]       # (H, 3H)
    b_ih = b_ih_ref[...]         # (1, 3H)
    b_hh = b_hh_ref[...]         # (1, 3H)

    # ---- hoisted input projection: one (bb*T_dec, E) @ (E, 3H) matmul -------
    emb2 = jnp.concatenate([emb_ref[b] for b in range(bb)], axis=0)   # (bb*T, E)
    gx_all = jnp.dot(emb2, w_ihT, preferred_element_type=jnp.float32) + b_ih

    # Regroup rows per time step (static slices; independent of the recurrence,
    # so this stays off the serial critical path).
    gx_steps = []
    for t in range(t_dec):
        rows = [gx_all[b * t_dec + t:b * t_dec + t + 1, :] for b in range(bb)]
        gx_steps.append(jnp.concatenate(rows, axis=0))                # (bb, 3H)

    # ---- GRU recurrence (torch.nn.GRU, gate order [r, z, n]), unrolled ------
    h = jnp.concatenate([h0_ref[b] for b in range(bb)], axis=0)       # (bb, H)
    h_steps = []
    for t in range(t_dec):
        gx = gx_steps[t]
        gh = jnp.dot(h, w_hhT, preferred_element_type=jnp.float32) + b_hh
        r = jax.nn.sigmoid(gx[:, 0:H] + gh[:, 0:H])
        z = jax.nn.sigmoid(gx[:, H:2 * H] + gh[:, H:2 * H])
        n = jnp.tanh(gx[:, 2 * H:3 * H] + r * gh[:, 2 * H:3 * H])
        h = (1.0 - z) * n + z * h
        h_steps.append(h)

    # ---- attention + output projection (per batch row, transpose-free) ------
    w_o1T = w_o1T_ref[...]       # (H, Vp)   rows [:H]  of hidden2linear weight
    w_o2T = w_o2T_ref[...]       # (H, Vp)   rows [H:]  of hidden2linear weight
    b_out = b_out_ref[...]       # (1, Vp)
    for b in range(bb):
        out_b = jnp.concatenate(
            [h_steps[t][b:b + 1, :] for t in range(t_dec)], axis=0)   # (T, H)
        hs_b = hs_ref[b]                                              # (T_enc, H)

        # s_T[t, e] = sum_h out[t, h] * hs[e, h]  (no explicit transpose)
        s = lax.dot_general(out_b, hs_b, (((1,), (1,)), ((), ())),
                            preferred_element_type=jnp.float32)       # (T, T_enc)
        s_max = jnp.max(s, axis=-1, keepdims=True)
        e = jnp.exp(s - s_max)
        denom = jnp.sum(e, axis=-1, keepdims=True)
        p = e * pl.reciprocal(denom, approx=True)                     # (T, T_enc)
        attn_ref[b, :, :] = p        # wrapper transposes to (B, T_enc, T_dec)

        # context: c[t, :] = sum_e p[t, e] * hs[e, :]
        c = jnp.dot(p, hs_b, preferred_element_type=jnp.float32)      # (T, H)

        # hidden2linear on concat([out, c], -1), via a split weight (no concat).
        logits = (jnp.dot(out_b, w_o1T, preferred_element_type=jnp.float32)
                  + jnp.dot(c, w_o2T, preferred_element_type=jnp.float32)
                  + b_out)                                            # (T, Vp)
        logits_ref[b, :, :] = logits
        state_ref[b, :, :] = h_steps[-1][b:b + 1, :]


def attention_decoder_forward(sequence, hs, h, params):
    """sequence: (B, T_dec) int32 tokens; hs: (B, T_enc, H); h: (1, B, H)."""
    # Embedding lookup (data-dependent gather) done as glue in plain JAX.
    emb = jnp.take(params["emb"], sequence, axis=0)                   # (B, T_dec, E)
    B, T_dec, E = emb.shape
    _, T_enc, H = hs.shape
    V = params["w_out"].shape[0]
    Vp = ((V + 127) // 128) * 128          # lane-dense logits (pad, slice after)

    # Up to 8 batch rows per grid step (fills vreg sublanes in the GRU math).
    Bb = max(d for d in range(1, min(B, 8) + 1) if B % d == 0)

    f32 = jnp.float32
    w_ihT = params["w_ih"].T.astype(f32)                              # (E, 3H)
    w_hhT = params["w_hh"].T.astype(f32)                              # (H, 3H)
    b_ih = params["b_ih"].reshape(1, -1).astype(f32)
    b_hh = params["b_hh"].reshape(1, -1).astype(f32)
    w_out = params["w_out"].astype(f32)                               # (V, 2H)
    w_o1T = jnp.zeros((H, Vp), f32).at[:, :V].set(w_out[:, :H].T)     # (H, Vp)
    w_o2T = jnp.zeros((H, Vp), f32).at[:, :V].set(w_out[:, H:].T)     # (H, Vp)
    b_out = jnp.zeros((1, Vp), f32).at[0, :V].set(params["b_out"].astype(f32))
    h0 = jnp.transpose(h, (1, 0, 2))                                  # (B, 1, H)

    kernel = functools.partial(attention_decoder_kernel,
                               hidden_dim=H, t_dec=T_dec, bb=Bb)

    out_shapes = (
        jax.ShapeDtypeStruct((B, T_dec, Vp), f32),      # padded logits
        jax.ShapeDtypeStruct((B, 1, H), f32),           # final GRU state
        jax.ShapeDtypeStruct((B, T_dec, T_enc), f32),   # attention in (t, e) order
    )

    grid_spec = pltpu.PrefetchScalarGridSpec(
        num_scalar_prefetch=0,
        grid=(B // Bb,),
        in_specs=[
            pl.BlockSpec((Bb, T_dec, E), lambda g: (g, 0, 0)),   # emb
            pl.BlockSpec((Bb, T_enc, H), lambda g: (g, 0, 0)),   # hs
            pl.BlockSpec((Bb, 1, H), lambda g: (g, 0, 0)),       # h0
            pl.BlockSpec((E, 3 * H), lambda g: (0, 0)),          # w_ih^T
            pl.BlockSpec((H, 3 * H), lambda g: (0, 0)),          # w_hh^T
            pl.BlockSpec((1, 3 * H), lambda g: (0, 0)),          # b_ih
            pl.BlockSpec((1, 3 * H), lambda g: (0, 0)),          # b_hh
            pl.BlockSpec((H, Vp), lambda g: (0, 0)),             # w_out^T rows :H
            pl.BlockSpec((H, Vp), lambda g: (0, 0)),             # w_out^T rows H:
            pl.BlockSpec((1, Vp), lambda g: (0, 0)),             # b_out
        ],
        out_specs=[
            pl.BlockSpec((Bb, T_dec, Vp), lambda g: (g, 0, 0)),
            pl.BlockSpec((Bb, 1, H), lambda g: (g, 0, 0)),
            pl.BlockSpec((Bb, T_dec, T_enc), lambda g: (g, 0, 0)),
        ],
    )

    logits_p, state_b, attn_td = pl.pallas_call(
        kernel,
        out_shape=out_shapes,
        grid_spec=grid_spec,
        compiler_params=pltpu.CompilerParams(
            dimension_semantics=("parallel",)),
    )(emb, hs, h0, w_ihT, w_hhT, b_ih, b_hh, w_o1T, w_o2T, b_out)

    logits = logits_p[:, :, :V]                        # drop vocab padding
    state = jnp.transpose(state_b, (1, 0, 2))          # (1, B, H), like torch GRU
    attn = jnp.transpose(attn_td, (0, 2, 1))           # (B, T_enc, T_dec)
    return logits, state, attn


def reference_forward(sequence, hs, h, params):
    """Pure-JAX reference reproducing the PyTorch forward."""
    emb = jnp.take(params["emb"], sequence, axis=0)
    H = hs.shape[2]
    w_ih, w_hh = params["w_ih"], params["w_hh"]
    b_ih, b_hh = params["b_ih"], params["b_hh"]

    def cell(h_prev, x_t):
        gx = x_t @ w_ih.T + b_ih
        gh = h_prev @ w_hh.T + b_hh
        r = jax.nn.sigmoid(gx[:, :H] + gh[:, :H])
        z = jax.nn.sigmoid(gx[:, H:2 * H] + gh[:, H:2 * H])
        n = jnp.tanh(gx[:, 2 * H:] + r * gh[:, 2 * H:])
        h_new = (1.0 - z) * n + z * h_prev
        return h_new, h_new

    h_final, outs = lax.scan(cell, h[0], jnp.transpose(emb, (1, 0, 2)))
    output = jnp.transpose(outs, (1, 0, 2))                   # (B, T_dec, H)
    s = jnp.einsum('beh,bth->bet', hs, output)                # (B, T_enc, T_dec)
    attn = jax.nn.softmax(s, axis=1)
    c = jnp.einsum('bet,beh->bth', attn, hs)                  # (B, T_dec, H)
    feat = jnp.concatenate([output, c], axis=2)
    logits = feat @ params["w_out"].T + params["b_out"]
    return logits, h_final[None], attn


if __name__ == "__main__":
    B, T_dec, T_enc = 2, 8, 8
    E, H, V = 32, 32, 40
    PAD_ID = 0   # stands in for char2id[' '] (padding_idx)

    key = jax.random.PRNGKey(0)
    ks = jax.random.split(key, 10)
    emb_table = 0.1 * jax.random.normal(ks[0], (V, E), jnp.float32)
    emb_table = emb_table.at[PAD_ID].set(0.0)   # padding_idx row is zero
    params = {
        "emb": emb_table,
        "w_ih": 0.1 * jax.random.normal(ks[1], (3 * H, E), jnp.float32),
        "w_hh": 0.1 * jax.random.normal(ks[2], (3 * H, H), jnp.float32),
        "b_ih": 0.1 * jax.random.normal(ks[3], (3 * H,), jnp.float32),
        "b_hh": 0.1 * jax.random.normal(ks[4], (3 * H,), jnp.float32),
        "w_out": 0.1 * jax.random.normal(ks[5], (V, 2 * H), jnp.float32),
        "b_out": 0.1 * jax.random.normal(ks[6], (V,), jnp.float32),
    }
    sequence = jax.random.randint(ks[7], (B, T_dec), 0, V)
    hs = 0.1 * jax.random.normal(ks[8], (B, T_enc, H), jnp.float32)
    h = 0.1 * jax.random.normal(ks[9], (1, B, H), jnp.float32)

    logits, state, attn = jax.block_until_ready(
        attention_decoder_forward(sequence, hs, h, params))

    ref_logits, ref_state, ref_attn = reference_forward(sequence, hs, h, params)
    assert logits.shape == (B, T_dec, V)
    assert state.shape == (1, B, H)
    assert attn.shape == (B, T_enc, T_dec)
    assert jnp.allclose(logits, ref_logits, atol=1e-2, rtol=1e-2)
    assert jnp.allclose(state, ref_state, atol=1e-2, rtol=1e-2)
    assert jnp.allclose(attn, ref_attn, atol=1e-2, rtol=1e-2)
    print("KERNEL_OK")
</pallas_src>

<mosaic_0001>
module attributes {stable_mosaic.version = 11 : i64} {
  func.func @attention_decoder_kernel(%arg0: i32, %arg1: memref<2x8x32xf32, #tpu.memory_space<vmem>>, %arg2: memref<2x8x32xf32, #tpu.memory_space<vmem>>, %arg3: memref<2x1x32xf32, #tpu.memory_space<vmem>>, %arg4: memref<32x96xf32, #tpu.memory_space<vmem>>, %arg5: memref<32x96xf32, #tpu.memory_space<vmem>>, %arg6: memref<1x96xf32, #tpu.memory_space<vmem>>, %arg7: memref<1x96xf32, #tpu.memory_space<vmem>>, %arg8: memref<32x128xf32, #tpu.memory_space<vmem>>, %arg9: memref<32x128xf32, #tpu.memory_space<vmem>>, %arg10: memref<1x128xf32, #tpu.memory_space<vmem>>, %arg11: memref<2x8x128xf32, #tpu.memory_space<vmem>>, %arg12: memref<2x1x32xf32, #tpu.memory_space<vmem>>, %arg13: memref<2x8x8xf32, #tpu.memory_space<vmem>>) attributes {dimension_semantics = [#tpu.dimension_semantics<parallel>], iteration_bounds = array<i64: 1>, scalar_prefetch = 0 : i64, scratch_operands = 0 : i64, tpu.core_type = #tpu.core_type<tc>, window_params = [{transform_indices = @transform_0, window_bounds = array<i64: 2, 8, 32>}, {transform_indices = @transform_1, window_bounds = array<i64: 2, 8, 32>}, {transform_indices = @transform_2, window_bounds = array<i64: 2, 1, 32>}, {pipeline_mode = #tpu.pipeline_mode<synchronous>, transform_indices = @transform_3, window_bounds = array<i64: 32, 96>}, {pipeline_mode = #tpu.pipeline_mode<synchronous>, transform_indices = @transform_4, window_bounds = array<i64: 32, 96>}, {pipeline_mode = #tpu.pipeline_mode<synchronous>, transform_indices = @transform_5, window_bounds = array<i64: 1, 96>}, {pipeline_mode = #tpu.pipeline_mode<synchronous>, transform_indices = @transform_6, window_bounds = array<i64: 1, 96>}, {pipeline_mode = #tpu.pipeline_mode<synchronous>, transform_indices = @transform_7, window_bounds = array<i64: 32, 128>}, {pipeline_mode = #tpu.pipeline_mode<synchronous>, transform_indices = @transform_8, window_bounds = array<i64: 32, 128>}, {pipeline_mode = #tpu.pipeline_mode<synchronous>, transform_indices = @transform_9, window_bounds = array<i64: 1, 128>}, {transform_indices = @transform_10, window_bounds = array<i64: 2, 8, 128>}, {transform_indices = @transform_11, window_bounds = array<i64: 2, 1, 32>}, {transform_indices = @transform_12, window_bounds = array<i64: 2, 8, 8>}]} {
    %c0 = arith.constant 0 : index
    %c0_0 = arith.constant 0 : index
    %0 = vector.load %arg4[%c0, %c0_0] : memref<32x96xf32, #tpu.memory_space<vmem>>, vector<32x96xf32>
    %c0_1 = arith.constant 0 : index
    %c0_2 = arith.constant 0 : index
    %1 = vector.load %arg5[%c0_1, %c0_2] : memref<32x96xf32, #tpu.memory_space<vmem>>, vector<32x96xf32>
    %c0_3 = arith.constant 0 : index
    %c0_4 = arith.constant 0 : index
    %2 = vector.load %arg6[%c0_3, %c0_4] : memref<1x96xf32, #tpu.memory_space<vmem>>, vector<1x96xf32>
    %c0_5 = arith.constant 0 : index
    %c0_6 = arith.constant 0 : index
    %3 = vector.load %arg7[%c0_5, %c0_6] : memref<1x96xf32, #tpu.memory_space<vmem>>, vector<1x96xf32>
    %c0_7 = arith.constant 0 : index
    %c0_8 = arith.constant 0 : index
    %c0_9 = arith.constant 0 : index
    %4 = vector.load %arg1[%c0_7, %c0_8, %c0_9] : memref<2x8x32xf32, #tpu.memory_space<vmem>>, vector<1x8x32xf32>
    %5 = vector.shape_cast %4 : vector<1x8x32xf32> to vector<8x32xf32>
    %c1 = arith.constant 1 : index
    %c0_10 = arith.constant 0 : index
    %c0_11 = arith.constant 0 : index
    %6 = vector.load %arg1[%c1, %c0_10, %c0_11] : memref<2x8x32xf32, #tpu.memory_space<vmem>>, vector<1x8x32xf32>
    %7 = vector.shape_cast %6 : vector<1x8x32xf32> to vector<8x32xf32>
    %8 = tpu.concatenate %5, %7 in 0 : vector<8x32xf32>, vector<8x32xf32> -> vector<16x32xf32>
    %cst = arith.constant dense<0.000000e+00> : vector<16x96xf32>
    %9 = tpu.matmul %8, %0, %cst {dimension_numbers = #tpu.dot_dimension_numbers<[1], [0], [0], [1], [0, 0, 1, 1], [], []>} : vector<16x32xf32>, vector<32x96xf32>, vector<16x96xf32> -> vector<16x96xf32>
    %10 = vector.broadcast %2 : vector<1x96xf32> to vector<16x96xf32>
    %11 = arith.addf %9, %10 : vector<16x96xf32>
    %12 = vector.extract_strided_slice %11 {offsets = [0, 0], sizes = [1, 96], strides = [1, 1]} : vector<16x96xf32> to vector<1x96xf32>
    %13 = vector.extract_strided_slice %11 {offsets = [8, 0], sizes = [1, 96], strides = [1, 1]} : vector<16x96xf32> to vector<1x96xf32>
    %14 = tpu.concatenate %12, %13 in 0 : vector<1x96xf32>, vector<1x96xf32> -> vector<2x96xf32>
    %15 = vector.extract_strided_slice %11 {offsets = [1, 0], sizes = [1, 96], strides = [1, 1]} : vector<16x96xf32> to vector<1x96xf32>
    %16 = vector.extract_strided_slice %11 {offsets = [9, 0], sizes = [1, 96], strides = [1, 1]} : vector<16x96xf32> to vector<1x96xf32>
    %17 = tpu.concatenate %15, %16 in 0 : vector<1x96xf32>, vector<1x96xf32> -> vector<2x96xf32>
    %18 = vector.extract_strided_slice %11 {offsets = [2, 0], sizes = [1, 96], strides = [1, 1]} : vector<16x96xf32> to vector<1x96xf32>
    %19 = vector.extract_strided_slice %11 {offsets = [10, 0], sizes = [1, 96], strides = [1, 1]} : vector<16x96xf32> to vector<1x96xf32>
    %20 = tpu.concatenate %18, %19 in 0 : vector<1x96xf32>, vector<1x96xf32> -> vector<2x96xf32>
    %21 = vector.extract_strided_slice %11 {offsets = [3, 0], sizes = [1, 96], strides = [1, 1]} : vector<16x96xf32> to vector<1x96xf32>
    %22 = vector.extract_strided_slice %11 {offsets = [11, 0], sizes = [1, 96], strides = [1, 1]} : vector<16x96xf32> to vector<1x96xf32>
    %23 = tpu.concatenate %21, %22 in 0 : vector<1x96xf32>, vector<1x96xf32> -> vector<2x96xf32>
    %24 = vector.extract_strided_slice %11 {offsets = [4, 0], sizes = [1, 96], strides = [1, 1]} : vector<16x96xf32> to vector<1x96xf32>
    %25 = vector.extract_strided_slice %11 {offsets = [12, 0], sizes = [1, 96], strides = [1, 1]} : vector<16x96xf32> to vector<1x96xf32>
    %26 = tpu.concatenate %24, %25 in 0 : vector<1x96xf32>, vector<1x96xf32> -> vector<2x96xf32>
    %27 = vector.extract_strided_slice %11 {offsets = [5, 0], sizes = [1, 96], strides = [1, 1]} : vector<16x96xf32> to vector<1x96xf32>
    %28 = vector.extract_strided_slice %11 {offsets = [13, 0], sizes = [1, 96], strides = [1, 1]} : vector<16x96xf32> to vector<1x96xf32>
    %29 = tpu.concatenate %27, %28 in 0 : vector<1x96xf32>, vector<1x96xf32> -> vector<2x96xf32>
    %30 = vector.extract_strided_slice %11 {offsets = [6, 0], sizes = [1, 96], strides = [1, 1]} : vector<16x96xf32> to vector<1x96xf32>
    %31 = vector.extract_strided_slice %11 {offsets = [14, 0], sizes = [1, 96], strides = [1, 1]} : vector<16x96xf32> to vector<1x96xf32>
    %32 = tpu.concatenate %30, %31 in 0 : vector<1x96xf32>, vector<1x96xf32> -> vector<2x96xf32>
    %33 = vector.extract_strided_slice %11 {offsets = [7, 0], sizes = [1, 96], strides = [1, 1]} : vector<16x96xf32> to vector<1x96xf32>
    %34 = vector.extract_strided_slice %11 {offsets = [15, 0], sizes = [1, 96], strides = [1, 1]} : vector<16x96xf32> to vector<1x96xf32>
    %35 = tpu.concatenate %33, %34 in 0 : vector<1x96xf32>, vector<1x96xf32> -> vector<2x96xf32>
    %c0_12 = arith.constant 0 : index
    %c0_13 = arith.constant 0 : index
    %c0_14 = arith.constant 0 : index
    %36 = vector.load %arg3[%c0_12, %c0_13, %c0_14] : memref<2x1x32xf32, #tpu.memory_space<vmem>>, vector<1x1x32xf32>
    %37 = vector.shape_cast %36 : vector<1x1x32xf32> to vector<1x32xf32>
    %c1_15 = arith.constant 1 : index
    %c0_16 = arith.constant 0 : index
    %c0_17 = arith.constant 0 : index
    %38 = vector.load %arg3[%c1_15, %c0_16, %c0_17] : memref<2x1x32xf32, #tpu.memory_space<vmem>>, vector<1x1x32xf32>
    %39 = vector.shape_cast %38 : vector<1x1x32xf32> to vector<1x32xf32>
    %40 = tpu.concatenate %37, %39 in 0 : vector<1x32xf32>, vector<1x32xf32> -> vector<2x32xf32>
    %cst_18 = arith.constant dense<0.000000e+00> : vector<2x96xf32>
    %41 = tpu.matmul %40, %1, %cst_18 {dimension_numbers = #tpu.dot_dimension_numbers<[1], [0], [0], [1], [0, 0, 1, 1], [], []>} : vector<2x32xf32>, vector<32x96xf32>, vector<2x96xf32> -> vector<2x96xf32>
    %42 = vector.broadcast %3 : vector<1x96xf32> to vector<2x96xf32>
    %43 = arith.addf %41, %42 : vector<2x96xf32>
    %44 = vector.extract_strided_slice %14 {offsets = [0, 0], sizes = [2, 32], strides = [1, 1]} : vector<2x96xf32> to vector<2x32xf32>
    %45 = vector.extract_strided_slice %43 {offsets = [0, 0], sizes = [2, 32], strides = [1, 1]} : vector<2x96xf32> to vector<2x32xf32>
    %46 = arith.addf %44, %45 : vector<2x32xf32>
    %47 = arith.negf %46 : vector<2x32xf32>
    %48 = math.exp %47 : vector<2x32xf32>
    %cst_19 = arith.constant 1.000000e+00 : f32
    %49 = vector.broadcast %cst_19 : f32 to vector<2x32xf32>
    %50 = arith.addf %49, %48 : vector<2x32xf32>
    %51 = arith.divf %49, %50 : vector<2x32xf32>
    %52 = vector.extract_strided_slice %14 {offsets = [0, 32], sizes = [2, 32], strides = [1, 1]} : vector<2x96xf32> to vector<2x32xf32>
    %53 = vector.extract_strided_slice %43 {offsets = [0, 32], sizes = [2, 32], strides = [1, 1]} : vector<2x96xf32> to vector<2x32xf32>
    %54 = arith.addf %52, %53 : vector<2x32xf32>
    %55 = arith.negf %54 : vector<2x32xf32>
    %56 = math.exp %55 : vector<2x32xf32>
    %cst_20 = arith.constant 1.000000e+00 : f32
    %57 = vector.broadcast %cst_20 : f32 to vector<2x32xf32>
    %58 = arith.addf %57, %56 : vector<2x32xf32>
    %59 = arith.divf %57, %58 : vector<2x32xf32>
    %60 = vector.extract_strided_slice %14 {offsets = [0, 64], sizes = [2, 32], strides = [1, 1]} : vector<2x96xf32> to vector<2x32xf32>
    %61 = vector.extract_strided_slice %43 {offsets = [0, 64], sizes = [2, 32], strides = [1, 1]} : vector<2x96xf32> to vector<2x32xf32>
    %62 = arith.mulf %51, %61 : vector<2x32xf32>
    %63 = arith.addf %60, %62 : vector<2x32xf32>
    %64 = math.tanh %63 : vector<2x32xf32>
    %cst_21 = arith.constant 1.000000e+00 : f32
    %65 = vector.broadcast %cst_21 : f32 to vector<2x32xf32>
    %66 = arith.subf %65, %59 : vector<2x32xf32>
    %67 = arith.mulf %66, %64 : vector<2x32xf32>
    %68 = arith.mulf %59, %40 : vector<2x32xf32>
    %69 = arith.addf %67, %68 : vector<2x32xf32>
    %cst_22 = arith.constant dense<0.000000e+00> : vector<2x96xf32>
    %70 = tpu.matmul %69, %1, %cst_22 {dimension_numbers = #tpu.dot_dimension_numbers<[1], [0], [0], [1], [0, 0, 1, 1], [], []>} : vector<2x32xf32>, vector<32x96xf32>, vector<2x96xf32> -> vector<2x96xf32>
    %71 = vector.broadcast %3 : vector<1x96xf32> to vector<2x96xf32>
    %72 = arith.addf %70, %71 : vector<2x96xf32>
    %73 = vector.extract_strided_slice %17 {offsets = [0, 0], sizes = [2, 32], strides = [1, 1]} : vector<2x96xf32> to vector<2x32xf32>
    %74 = vector.extract_strided_slice %72 {offsets = [0, 0], sizes = [2, 32], strides = [1, 1]} : vector<2x96xf32> to vector<2x32xf32>
    %75 = arith.addf %73, %74 : vector<2x32xf32>
    %76 = arith.negf %75 : vector<2x32xf32>
    %77 = math.exp %76 : vector<2x32xf32>
    %cst_23 = arith.constant 1.000000e+00 : f32
    %78 = vector.broadcast %cst_23 : f32 to vector<2x32xf32>
    %79 = arith.addf %78, %77 : vector<2x32xf32>
    %80 = arith.divf %78, %79 : vector<2x32xf32>
    %81 = vector.extract_strided_slice %17 {offsets = [0, 32], sizes = [2, 32], strides = [1, 1]} : vector<2x96xf32> to vector<2x32xf32>
    %82 = vector.extract_strided_slice %72 {offsets = [0, 32], sizes = [2, 32], strides = [1, 1]} : vector<2x96xf32> to vector<2x32xf32>
    %83 = arith.addf %81, %82 : vector<2x32xf32>
    %84 = arith.negf %83 : vector<2x32xf32>
    %85 = math.exp %84 : vector<2x32xf32>
    %cst_24 = arith.constant 1.000000e+00 : f32
    %86 = vector.broadcast %cst_24 : f32 to vector<2x32xf32>
    %87 = arith.addf %86, %85 : vector<2x32xf32>
    %88 = arith.divf %86, %87 : vector<2x32xf32>
    %89 = vector.extract_strided_slice %17 {offsets = [0, 64], sizes = [2, 32], strides = [1, 1]} : vector<2x96xf32> to vector<2x32xf32>
    %90 = vector.extract_strided_slice %72 {offsets = [0, 64], sizes = [2, 32], strides = [1, 1]} : vector<2x96xf32> to vector<2x32xf32>
    %91 = arith.mulf %80, %90 : vector<2x32xf32>
    %92 = arith.addf %89, %91 : vector<2x32xf32>
    %93 = math.tanh %92 : vector<2x32xf32>
    %cst_25 = arith.constant 1.000000e+00 : f32
    %94 = vector.broadcast %cst_25 : f32 to vector<2x32xf32>
    %95 = arith.subf %94, %88 : vector<2x32xf32>
    %96 = arith.mulf %95, %93 : vector<2x32xf32>
    %97 = arith.mulf %88, %69 : vector<2x32xf32>
    %98 = arith.addf %96, %97 : vector<2x32xf32>
    %cst_26 = arith.constant dense<0.000000e+00> : vector<2x96xf32>
    %99 = tpu.matmul %98, %1, %cst_26 {dimension_numbers = #tpu.dot_dimension_numbers<[1], [0], [0], [1], [0, 0, 1, 1], [], []>} : vector<2x32xf32>, vector<32x96xf32>, vector<2x96xf32> -> vector<2x96xf32>
    %100 = vector.broadcast %3 : vector<1x96xf32> to vector<2x96xf32>
    %101 = arith.addf %99, %100 : vector<2x96xf32>
    %102 = vector.extract_strided_slice %20 {offsets = [0, 0], sizes = [2, 32], strides = [1, 1]} : vector<2x96xf32> to vector<2x32xf32>
    %103 = vector.extract_strided_slice %101 {offsets = [0, 0], sizes = [2, 32], strides = [1, 1]} : vector<2x96xf32> to vector<2x32xf32>
    %104 = arith.addf %102, %103 : vector<2x32xf32>
    %105 = arith.negf %104 : vector<2x32xf32>
    %106 = math.exp %105 : vector<2x32xf32>
    %cst_27 = arith.constant 1.000000e+00 : f32
    %107 = vector.broadcast %cst_27 : f32 to vector<2x32xf32>
    %108 = arith.addf %107, %106 : vector<2x32xf32>
    %109 = arith.divf %107, %108 : vector<2x32xf32>
    %110 = vector.extract_strided_slice %20 {offsets = [0, 32], sizes = [2, 32], strides = [1, 1]} : vector<2x96xf32> to vector<2x32xf32>
    %111 = vector.extract_strided_slice %101 {offsets = [0, 32], sizes = [2, 32], strides = [1, 1]} : vector<2x96xf32> to vector<2x32xf32>
    %112 = arith.addf %110, %111 : vector<2x32xf32>
    %113 = arith.negf %112 : vector<2x32xf32>
    %114 = math.exp %113 : vector<2x32xf32>
    %cst_28 = arith.constant 1.000000e+00 : f32
    %115 = vector.broadcast %cst_28 : f32 to vector<2x32xf32>
    %116 = arith.addf %115, %114 : vector<2x32xf32>
    %117 = arith.divf %115, %116 : vector<2x32xf32>
    %118 = vector.extract_strided_slice %20 {offsets = [0, 64], sizes = [2, 32], strides = [1, 1]} : vector<2x96xf32> to vector<2x32xf32>
    %119 = vector.extract_strided_slice %101 {offsets = [0, 64], sizes = [2, 32], strides = [1, 1]} : vector<2x96xf32> to vector<2x32xf32>
    %120 = arith.mulf %109, %119 : vector<2x32xf32>
    %121 = arith.addf %118, %120 : vector<2x32xf32>
    %122 = math.tanh %121 : vector<2x32xf32>
    %cst_29 = arith.constant 1.000000e+00 : f32
    %123 = vector.broadcast %cst_29 : f32 to vector<2x32xf32>
    %124 = arith.subf %123, %117 : vector<2x32xf32>
    %125 = arith.mulf %124, %122 : vector<2x32xf32>
    %126 = arith.mulf %117, %98 : vector<2x32xf32>
    %127 = arith.addf %125, %126 : vector<2x32xf32>
    %cst_30 = arith.constant dense<0.000000e+00> : vector<2x96xf32>
    %128 = tpu.matmul %127, %1, %cst_30 {dimension_numbers = #tpu.dot_dimension_numbers<[1], [0], [0], [1], [0, 0, 1, 1], [], []>} : vector<2x32xf32>, vector<32x96xf32>, vector<2x96xf32> -> vector<2x96xf32>
    %129 = vector.broadcast %3 : vector<1x96xf32> to vector<2x96xf32>
    %130 = arith.addf %128, %129 : vector<2x96xf32>
    %131 = vector.extract_strided_slice %23 {offsets = [0, 0], sizes = [2, 32], strides = [1, 1]} : vector<2x96xf32> to vector<2x32xf32>
    %132 = vector.extract_strided_slice %130 {offsets = [0, 0], sizes = [2, 32], strides = [1, 1]} : vector<2x96xf32> to vector<2x32xf32>
    %133 = arith.addf %131, %132 : vector<2x32xf32>
    %134 = arith.negf %133 : vector<2x32xf32>
    %135 = math.exp %134 : vector<2x32xf32>
    %cst_31 = arith.constant 1.000000e+00 : f32
    %136 = vector.broadcast %cst_31 : f32 to vector<2x32xf32>
    %137 = arith.addf %136, %135 : vector<2x32xf32>
    %138 = arith.divf %136, %137 : vector<2x32xf32>
    %139 = vector.extract_strided_slice %23 {offsets = [0, 32], sizes = [2, 32], strides = [1, 1]} : vector<2x96xf32> to vector<2x32xf32>
    %140 = vector.extract_strided_slice %130 {offsets = [0, 32], sizes = [2, 32], strides = [1, 1]} : vector<2x96xf32> to vector<2x32xf32>
    %141 = arith.addf %139, %140 : vector<2x32xf32>
    %142 = arith.negf %141 : vector<2x32xf32>
    %143 = math.exp %142 : vector<2x32xf32>
    %cst_32 = arith.constant 1.000000e+00 : f32
    %144 = vector.broadcast %cst_32 : f32 to vector<2x32xf32>
    %145 = arith.addf %144, %143 : vector<2x32xf32>
    %146 = arith.divf %144, %145 : vector<2x32xf32>
    %147 = vector.extract_strided_slice %23 {offsets = [0, 64], sizes = [2, 32], strides = [1, 1]} : vector<2x96xf32> to vector<2x32xf32>
    %148 = vector.extract_strided_slice %130 {offsets = [0, 64], sizes = [2, 32], strides = [1, 1]} : vector<2x96xf32> to vector<2x32xf32>
    %149 = arith.mulf %138, %148 : vector<2x32xf32>
    %150 = arith.addf %147, %149 : vector<2x32xf32>
    %151 = math.tanh %150 : vector<2x32xf32>
    %cst_33 = arith.constant 1.000000e+00 : f32
    %152 = vector.broadcast %cst_33 : f32 to vector<2x32xf32>
    %153 = arith.subf %152, %146 : vector<2x32xf32>
    %154 = arith.mulf %153, %151 : vector<2x32xf32>
    %155 = arith.mulf %146, %127 : vector<2x32xf32>
    %156 = arith.addf %154, %155 : vector<2x32xf32>
    %cst_34 = arith.constant dense<0.000000e+00> : vector<2x96xf32>
    %157 = tpu.matmul %156, %1, %cst_34 {dimension_numbers = #tpu.dot_dimension_numbers<[1], [0], [0], [1], [0, 0, 1, 1], [], []>} : vector<2x32xf32>, vector<32x96xf32>, vector<2x96xf32> -> vector<2x96xf32>
    %158 = vector.broadcast %3 : vector<1x96xf32> to vector<2x96xf32>
    %159 = arith.addf %157, %158 : vector<2x96xf32>
    %160 = vector.extract_strided_slice %26 {offsets = [0, 0], sizes = [2, 32], strides = [1, 1]} : vector<2x96xf32> to vector<2x32xf32>
    %161 = vector.extract_strided_slice %159 {offsets = [0, 0], sizes = [2, 32], strides = [1, 1]} : vector<2x96xf32> to vector<2x32xf32>
    %162 = arith.addf %160, %161 : vector<2x32xf32>
    %163 = arith.negf %162 : vector<2x32xf32>
    %164 = math.exp %163 : vector<2x32xf32>
    %cst_35 = arith.constant 1.000000e+00 : f32
    %165 = vector.broadcast %cst_35 : f32 to vector<2x32xf32>
    %166 = arith.addf %165, %164 : vector<2x32xf32>
    %167 = arith.divf %165, %166 : vector<2x32xf32>
    %168 = vector.extract_strided_slice %26 {offsets = [0, 32], sizes = [2, 32], strides = [1, 1]} : vector<2x96xf32> to vector<2x32xf32>
    %169 = vector.extract_strided_slice %159 {offsets = [0, 32], sizes = [2, 32], strides = [1, 1]} : vector<2x96xf32> to vector<2x32xf32>
    %170 = arith.addf %168, %169 : vector<2x32xf32>
    %171 = arith.negf %170 : vector<2x32xf32>
    %172 = math.exp %171 : vector<2x32xf32>
    %cst_36 = arith.constant 1.000000e+00 : f32
    %173 = vector.broadcast %cst_36 : f32 to vector<2x32xf32>
    %174 = arith.addf %173, %172 : vector<2x32xf32>
    %175 = arith.divf %173, %174 : vector<2x32xf32>
    %176 = vector.extract_strided_slice %26 {offsets = [0, 64], sizes = [2, 32], strides = [1, 1]} : vector<2x96xf32> to vector<2x32xf32>
    %177 = vector.extract_strided_slice %159 {offsets = [0, 64], sizes = [2, 32], strides = [1, 1]} : vector<2x96xf32> to vector<2x32xf32>
    %178 = arith.mulf %167, %177 : vector<2x32xf32>
    %179 = arith.addf %176, %178 : vector<2x32xf32>
    %180 = math.tanh %179 : vector<2x32xf32>
    %cst_37 = arith.constant 1.000000e+00 : f32
    %181 = vector.broadcast %cst_37 : f32 to vector<2x32xf32>
    %182 = arith.subf %181, %175 : vector<2x32xf32>
    %183 = arith.mulf %182, %180 : vector<2x32xf32>
    %184 = arith.mulf %175, %156 : vector<2x32xf32>
    %185 = arith.addf %183, %184 : vector<2x32xf32>
    %cst_38 = arith.constant dense<0.000000e+00> : vector<2x96xf32>
    %186 = tpu.matmul %185, %1, %cst_38 {dimension_numbers = #tpu.dot_dimension_numbers<[1], [0], [0], [1], [0, 0, 1, 1], [], []>} : vector<2x32xf32>, vector<32x96xf32>, vector<2x96xf32> -> vector<2x96xf32>
    %187 = vector.broadcast %3 : vector<1x96xf32> to vector<2x96xf32>
    %188 = arith.addf %186, %187 : vector<2x96xf32>
    %189 = vector.extract_strided_slice %29 {offsets = [0, 0], sizes = [2, 32], strides = [1, 1]} : vector<2x96xf32> to vector<2x32xf32>
    %190 = vector.extract_strided_slice %188 {offsets = [0, 0], sizes = [2, 32], strides = [1, 1]} : vector<2x96xf32> to vector<2x32xf32>
    %191 = arith.addf %189, %190 : vector<2x32xf32>
    %192 = arith.negf %191 : vector<2x32xf32>
    %193 = math.exp %192 : vector<2x32xf32>
    %cst_39 = arith.constant 1.000000e+00 : f32
    %194 = vector.broadcast %cst_39 : f32 to vector<2x32xf32>
    %195 = arith.addf %194, %193 : vector<2x32xf32>
    %196 = arith.divf %194, %195 : vector<2x32xf32>
    %197 = vector.extract_strided_slice %29 {offsets = [0, 32], sizes = [2, 32], strides = [1, 1]} : vector<2x96xf32> to vector<2x32xf32>
    %198 = vector.extract_strided_slice %188 {offsets = [0, 32], sizes = [2, 32], strides = [1, 1]} : vector<2x96xf32> to vector<2x32xf32>
    %199 = arith.addf %197, %198 : vector<2x32xf32>
    %200 = arith.negf %199 : vector<2x32xf32>
    %201 = math.exp %200 : vector<2x32xf32>
    %cst_40 = arith.constant 1.000000e+00 : f32
    %202 = vector.broadcast %cst_40 : f32 to vector<2x32xf32>
    %203 = arith.addf %202, %201 : vector<2x32xf32>
    %204 = arith.divf %202, %203 : vector<2x32xf32>
    %205 = vector.extract_strided_slice %29 {offsets = [0, 64], sizes = [2, 32], strides = [1, 1]} : vector<2x96xf32> to vector<2x32xf32>
    %206 = vector.extract_strided_slice %188 {offsets = [0, 64], sizes = [2, 32], strides = [1, 1]} : vector<2x96xf32> to vector<2x32xf32>
    %207 = arith.mulf %196, %206 : vector<2x32xf32>
    %208 = arith.addf %205, %207 : vector<2x32xf32>
    %209 = math.tanh %208 : vector<2x32xf32>
    %cst_41 = arith.constant 1.000000e+00 : f32
    %210 = vector.broadcast %cst_41 : f32 to vector<2x32xf32>
    %211 = arith.subf %210, %204 : vector<2x32xf32>
    %212 = arith.mulf %211, %209 : vector<2x32xf32>
    %213 = arith.mulf %204, %185 : vector<2x32xf32>
    %214 = arith.addf %212, %213 : vector<2x32xf32>
    %cst_42 = arith.constant dense<0.000000e+00> : vector<2x96xf32>
    %215 = tpu.matmul %214, %1, %cst_42 {dimension_numbers = #tpu.dot_dimension_numbers<[1], [0], [0], [1], [0, 0, 1, 1], [], []>} : vector<2x32xf32>, vector<32x96xf32>, vector<2x96xf32> -> vector<2x96xf32>
    %216 = vector.broadcast %3 : vector<1x96xf32> to vector<2x96xf32>
    %217 = arith.addf %215, %216 : vector<2x96xf32>
    %218 = vector.extract_strided_slice %32 {offsets = [0, 0], sizes = [2, 32], strides = [1, 1]} : vector<2x96xf32> to vector<2x32xf32>
    %219 = vector.extract_strided_slice %217 {offsets = [0, 0], sizes = [2, 32], strides = [1, 1]} : vector<2x96xf32> to vector<2x32xf32>
    %220 = arith.addf %218, %219 : vector<2x32xf32>
    %221 = arith.negf %220 : vector<2x32xf32>
    %222 = math.exp %221 : vector<2x32xf32>
    %cst_43 = arith.constant 1.000000e+00 : f32
    %223 = vector.broadcast %cst_43 : f32 to vector<2x32xf32>
    %224 = arith.addf %223, %222 : vector<2x32xf32>
    %225 = arith.divf %223, %224 : vector<2x32xf32>
    %226 = vector.extract_strided_slice %32 {offsets = [0, 32], sizes = [2, 32], strides = [1, 1]} : vector<2x96xf32> to vector<2x32xf32>
    %227 = vector.extract_strided_slice %217 {offsets = [0, 32], sizes = [2, 32], strides = [1, 1]} : vector<2x96xf32> to vector<2x32xf32>
    %228 = arith.addf %226, %227 : vector<2x32xf32>
    %229 = arith.negf %228 : vector<2x32xf32>
    %230 = math.exp %229 : vector<2x32xf32>
    %cst_44 = arith.constant 1.000000e+00 : f32
    %231 = vector.broadcast %cst_44 : f32 to vector<2x32xf32>
    %232 = arith.addf %231, %230 : vector<2x32xf32>
    %233 = arith.divf %231, %232 : vector<2x32xf32>
    %234 = vector.extract_strided_slice %32 {offsets = [0, 64], sizes = [2, 32], strides = [1, 1]} : vector<2x96xf32> to vector<2x32xf32>
    %235 = vector.extract_strided_slice %217 {offsets = [0, 64], sizes = [2, 32], strides = [1, 1]} : vector<2x96xf32> to vector<2x32xf32>
    %236 = arith.mulf %225, %235 : vector<2x32xf32>
    %237 = arith.addf %234, %236 : vector<2x32xf32>
    %238 = math.tanh %237 : vector<2x32xf32>
    %cst_45 = arith.constant 1.000000e+00 : f32
    %239 = vector.broadcast %cst_45 : f32 to vector<2x32xf32>
    %240 = arith.subf %239, %233 : vector<2x32xf32>
    %241 = arith.mulf %240, %238 : vector<2x32xf32>
    %242 = arith.mulf %233, %214 : vector<2x32xf32>
    %243 = arith.addf %241, %242 : vector<2x32xf32>
    %cst_46 = arith.constant dense<0.000000e+00> : vector<2x96xf32>
    %244 = tpu.matmul %243, %1, %cst_46 {dimension_numbers = #tpu.dot_dimension_numbers<[1], [0], [0], [1], [0, 0, 1, 1], [], []>} : vector<2x32xf32>, vector<32x96xf32>, vector<2x96xf32> -> vector<2x96xf32>
    %245 = vector.broadcast %3 : vector<1x96xf32> to vector<2x96xf32>
    %246 = arith.addf %244, %245 : vector<2x96xf32>
    %247 = vector.extract_strided_slice %35 {offsets = [0, 0], sizes = [2, 32], strides = [1, 1]} : vector<2x96xf32> to vector<2x32xf32>
    %248 = vector.extract_strided_slice %246 {offsets = [0, 0], sizes = [2, 32], strides = [1, 1]} : vector<2x96xf32> to vector<2x32xf32>
    %249 = arith.addf %247, %248 : vector<2x32xf32>
    %250 = arith.negf %249 : vector<2x32xf32>
    %251 = math.exp %250 : vector<2x32xf32>
    %cst_47 = arith.constant 1.000000e+00 : f32
    %252 = vector.broadcast %cst_47 : f32 to vector<2x32xf32>
    %253 = arith.addf %252, %251 : vector<2x32xf32>
    %254 = arith.divf %252, %253 : vector<2x32xf32>
    %255 = vector.extract_strided_slice %35 {offsets = [0, 32], sizes = [2, 32], strides = [1, 1]} : vector<2x96xf32> to vector<2x32xf32>
    %256 = vector.extract_strided_slice %246 {offsets = [0, 32], sizes = [2, 32], strides = [1, 1]} : vector<2x96xf32> to vector<2x32xf32>
    %257 = arith.addf %255, %256 : vector<2x32xf32>
    %258 = arith.negf %257 : vector<2x32xf32>
    %259 = math.exp %258 : vector<2x32xf32>
    %cst_48 = arith.constant 1.000000e+00 : f32
    %260 = vector.broadcast %cst_48 : f32 to vector<2x32xf32>
    %261 = arith.addf %260, %259 : vector<2x32xf32>
    %262 = arith.divf %260, %261 : vector<2x32xf32>
    %263 = vector.extract_strided_slice %35 {offsets = [0, 64], sizes = [2, 32], strides = [1, 1]} : vector<2x96xf32> to vector<2x32xf32>
    %264 = vector.extract_strided_slice %246 {offsets = [0, 64], sizes = [2, 32], strides = [1, 1]} : vector<2x96xf32> to vector<2x32xf32>
    %265 = arith.mulf %254, %264 : vector<2x32xf32>
    %266 = arith.addf %263, %265 : vector<2x32xf32>
    %267 = math.tanh %266 : vector<2x32xf32>
    %cst_49 = arith.constant 1.000000e+00 : f32
    %268 = vector.broadcast %cst_49 : f32 to vector<2x32xf32>
    %269 = arith.subf %268, %262 : vector<2x32xf32>
    %270 = arith.mulf %269, %267 : vector<2x32xf32>
    %271 = arith.mulf %262, %243 : vector<2x32xf32>
    %272 = arith.addf %270, %271 : vector<2x32xf32>
    %c0_50 = arith.constant 0 : index
    %c0_51 = arith.constant 0 : index
    %273 = vector.load %arg8[%c0_50, %c0_51] : memref<32x128xf32, #tpu.memory_space<vmem>>, vector<32x128xf32>
    %c0_52 = arith.constant 0 : index
    %c0_53 = arith.constant 0 : index
    %274 = vector.load %arg9[%c0_52, %c0_53] : memref<32x128xf32, #tpu.memory_space<vmem>>, vector<32x128xf32>
    %c0_54 = arith.constant 0 : index
    %c0_55 = arith.constant 0 : index
    %275 = vector.load %arg10[%c0_54, %c0_55] : memref<1x128xf32, #tpu.memory_space<vmem>>, vector<1x128xf32>
    %276 = vector.extract_strided_slice %69 {offsets = [0, 0], sizes = [1, 32], strides = [1, 1]} : vector<2x32xf32> to vector<1x32xf32>
    %277 = vector.extract_strided_slice %98 {offsets = [0, 0], sizes = [1, 32], strides = [1, 1]} : vector<2x32xf32> to vector<1x32xf32>
    %278 = vector.extract_strided_slice %127 {offsets = [0, 0], sizes = [1, 32], strides = [1, 1]} : vector<2x32xf32> to vector<1x32xf32>
    %279 = vector.extract_strided_slice %156 {offsets = [0, 0], sizes = [1, 32], strides = [1, 1]} : vector<2x32xf32> to vector<1x32xf32>
    %280 = vector.extract_strided_slice %185 {offsets = [0, 0], sizes = [1, 32], strides = [1, 1]} : vector<2x32xf32> to vector<1x32xf32>
    %281 = vector.extract_strided_slice %214 {offsets = [0, 0], sizes = [1, 32], strides = [1, 1]} : vector<2x32xf32> to vector<1x32xf32>
    %282 = vector.extract_strided_slice %243 {offsets = [0, 0], sizes = [1, 32], strides = [1, 1]} : vector<2x32xf32> to vector<1x32xf32>
    %283 = vector.extract_strided_slice %272 {offsets = [0, 0], sizes = [1, 32], strides = [1, 1]} : vector<2x32xf32> to vector<1x32xf32>
    %284 = tpu.concatenate %276, %277, %278, %279, %280, %281, %282, %283 in 0 : vector<1x32xf32>, vector<1x32xf32>, vector<1x32xf32>, vector<1x32xf32>, vector<1x32xf32>, vector<1x32xf32>, vector<1x32xf32>, vector<1x32xf32> -> vector<8x32xf32>
    %c0_56 = arith.constant 0 : index
    %c0_57 = arith.constant 0 : index
    %c0_58 = arith.constant 0 : index
    %285 = vector.load %arg2[%c0_56, %c0_57, %c0_58] : memref<2x8x32xf32, #tpu.memory_space<vmem>>, vector<1x8x32xf32>
    %286 = vector.shape_cast %285 : vector<1x8x32xf32> to vector<8x32xf32>
    %cst_59 = arith.constant dense<0.000000e+00> : vector<8x8xf32>
    %287 = tpu.matmul %284, %286, %cst_59 {dimension_numbers = #tpu.dot_dimension_numbers<[1], [1], [0], [0], [0, 0, 1, 0], [], []>} : vector<8x32xf32>, vector<8x32xf32>, vector<8x8xf32> -> vector<8x8xf32>
    %cst_60 = arith.constant dense<0xFF800000> : vector<8xf32>
    %288 = vector.multi_reduction <maximumf>, %287, %cst_60 [1] : vector<8x8xf32> to vector<8xf32>
    %289 = vector.shape_cast %288 : vector<8xf32> to vector<8x1xf32>
    %290 = vector.broadcast %289 : vector<8x1xf32> to vector<8x8xf32>
    %291 = arith.subf %287, %290 : vector<8x8xf32>
    %292 = math.exp %291 : vector<8x8xf32>
    %cst_61 = arith.constant dense<0.000000e+00> : vector<8xf32>
    %293 = vector.multi_reduction <add>, %292, %cst_61 [1] : vector<8x8xf32> to vector<8xf32>
    %294 = vector.shape_cast %293 : vector<8xf32> to vector<8x1xf32>
    %295 = tpu.reciprocal %294 {approx = true} : vector<8x1xf32> -> vector<8x1xf32>
    %296 = vector.broadcast %295 : vector<8x1xf32> to vector<8x8xf32>
    %297 = arith.mulf %292, %296 : vector<8x8xf32>
    %c0_62 = arith.constant 0 : index
    %c0_63 = arith.constant 0 : index
    %c0_64 = arith.constant 0 : index
    %298 = vector.load %arg13[%c0_62, %c0_63, %c0_64] : memref<2x8x8xf32, #tpu.memory_space<vmem>>, vector<1x8x8xf32>
    %299 = vector.shape_cast %298 : vector<1x8x8xf32> to vector<8x8xf32>
    %300 = vector.shape_cast %297 : vector<8x8xf32> to vector<1x8x8xf32>
    tpu.vector_store %arg13[%c0_62, %c0_63, %c0_64], %300 {strides = array<i32>} : memref<2x8x8xf32, #tpu.memory_space<vmem>>, vector<1x8x8xf32>,
    %cst_65 = arith.constant dense<0.000000e+00> : vector<8x32xf32>
    %301 = tpu.matmul %297, %286, %cst_65 {dimension_numbers = #tpu.dot_dimension_numbers<[1], [0], [0], [1], [0, 0, 1, 1], [], []>} : vector<8x8xf32>, vector<8x32xf32>, vector<8x32xf32> -> vector<8x32xf32>
    %cst_66 = arith.constant dense<0.000000e+00> : vector<8x128xf32>
    %302 = tpu.matmul %284, %273, %cst_66 {dimension_numbers = #tpu.dot_dimension_numbers<[1], [0], [0], [1], [0, 0, 1, 1], [], []>} : vector<8x32xf32>, vector<32x128xf32>, vector<8x128xf32> -> vector<8x128xf32>
    %cst_67 = arith.constant dense<0.000000e+00> : vector<8x128xf32>
    %303 = tpu.matmul %301, %274, %cst_67 {dimension_numbers = #tpu.dot_dimension_numbers<[1], [0], [0], [1], [0, 0, 1, 1], [], []>} : vector<8x32xf32>, vector<32x128xf32>, vector<8x128xf32> -> vector<8x128xf32>
    %304 = arith.addf %302, %303 : vector<8x128xf32>
    %305 = vector.broadcast %275 : vector<1x128xf32> to vector<8x128xf32>
    %306 = arith.addf %304, %305 : vector<8x128xf32>
    %c0_68 = arith.constant 0 : index
    %c0_69 = arith.constant 0 : index
    %c0_70 = arith.constant 0 : index
    %307 = vector.load %arg11[%c0_68, %c0_69, %c0_70] : memref<2x8x128xf32, #tpu.memory_space<vmem>>, vector<1x8x128xf32>
    %308 = vector.shape_cast %307 : vector<1x8x128xf32> to vector<8x128xf32>
    %309 = vector.shape_cast %306 : vector<8x128xf32> to vector<1x8x128xf32>
    tpu.vector_store %arg11[%c0_68, %c0_69, %c0_70], %309 {strides = array<i32>} : memref<2x8x128xf32, #tpu.memory_space<vmem>>, vector<1x8x128xf32>,
    %310 = vector.extract_strided_slice %272 {offsets = [0, 0], sizes = [1, 32], strides = [1, 1]} : vector<2x32xf32> to vector<1x32xf32>
    %c0_71 = arith.constant 0 : index
    %c0_72 = arith.constant 0 : index
    %c0_73 = arith.constant 0 : index
    %311 = vector.load %arg12[%c0_71, %c0_72, %c0_73] : memref<2x1x32xf32, #tpu.memory_space<vmem>>, vector<1x1x32xf32>
    %312 = vector.shape_cast %311 : vector<1x1x32xf32> to vector<1x32xf32>
    %313 = vector.shape_cast %310 : vector<1x32xf32> to vector<1x1x32xf32>
    tpu.vector_store %arg12[%c0_71, %c0_72, %c0_73], %313 {strides = array<i32>} : memref<2x1x32xf32, #tpu.memory_space<vmem>>, vector<1x1x32xf32>,
    %314 = vector.extract_strided_slice %69 {offsets = [1, 0], sizes = [1, 32], strides = [1, 1]} : vector<2x32xf32> to vector<1x32xf32>
    %315 = vector.extract_strided_slice %98 {offsets = [1, 0], sizes = [1, 32], strides = [1, 1]} : vector<2x32xf32> to vector<1x32xf32>
    %316 = vector.extract_strided_slice %127 {offsets = [1, 0], sizes = [1, 32], strides = [1, 1]} : vector<2x32xf32> to vector<1x32xf32>
    %317 = vector.extract_strided_slice %156 {offsets = [1, 0], sizes = [1, 32], strides = [1, 1]} : vector<2x32xf32> to vector<1x32xf32>
    %318 = vector.extract_strided_slice %185 {offsets = [1, 0], sizes = [1, 32], strides = [1, 1]} : vector<2x32xf32> to vector<1x32xf32>
    %319 = vector.extract_strided_slice %214 {offsets = [1, 0], sizes = [1, 32], strides = [1, 1]} : vector<2x32xf32> to vector<1x32xf32>
    %320 = vector.extract_strided_slice %243 {offsets = [1, 0], sizes = [1, 32], strides = [1, 1]} : vector<2x32xf32> to vector<1x32xf32>
    %321 = vector.extract_strided_slice %272 {offsets = [1, 0], sizes = [1, 32], strides = [1, 1]} : vector<2x32xf32> to vector<1x32xf32>
    %322 = tpu.concatenate %314, %315, %316, %317, %318, %319, %320, %321 in 0 : vector<1x32xf32>, vector<1x32xf32>, vector<1x32xf32>, vector<1x32xf32>, vector<1x32xf32>, vector<1x32xf32>, vector<1x32xf32>, vector<1x32xf32> -> vector<8x32xf32>
    %c1_74 = arith.constant 1 : index
    %c0_75 = arith.constant 0 : index
    %c0_76 = arith.constant 0 : index
    %323 = vector.load %arg2[%c1_74, %c0_75, %c0_76] : memref<2x8x32xf32, #tpu.memory_space<vmem>>, vector<1x8x32xf32>
    %324 = vector.shape_cast %323 : vector<1x8x32xf32> to vector<8x32xf32>
    %cst_77 = arith.constant dense<0.000000e+00> : vector<8x8xf32>
    %325 = tpu.matmul %322, %324, %cst_77 {dimension_numbers = #tpu.dot_dimension_numbers<[1], [1], [0], [0], [0, 0, 1, 0], [], []>} : vector<8x32xf32>, vector<8x32xf32>, vector<8x8xf32> -> vector<8x8xf32>
    %cst_78 = arith.constant dense<0xFF800000> : vector<8xf32>
    %326 = vector.multi_reduction <maximumf>, %325, %cst_78 [1] : vector<8x8xf32> to vector<8xf32>
    %327 = vector.shape_cast %326 : vector<8xf32> to vector<8x1xf32>
    %328 = vector.broadcast %327 : vector<8x1xf32> to vector<8x8xf32>
    %329 = arith.subf %325, %328 : vector<8x8xf32>
    %330 = math.exp %329 : vector<8x8xf32>
    %cst_79 = arith.constant dense<0.000000e+00> : vector<8xf32>
    %331 = vector.multi_reduction <add>, %330, %cst_79 [1] : vector<8x8xf32> to vector<8xf32>
    %332 = vector.shape_cast %331 : vector<8xf32> to vector<8x1xf32>
    %333 = tpu.reciprocal %332 {approx = true} : vector<8x1xf32> -> vector<8x1xf32>
    %334 = vector.broadcast %333 : vector<8x1xf32> to vector<8x8xf32>
    %335 = arith.mulf %330, %334 : vector<8x8xf32>
    %c1_80 = arith.constant 1 : index
    %c0_81 = arith.constant 0 : index
    %c0_82 = arith.constant 0 : index
    %336 = vector.load %arg13[%c1_80, %c0_81, %c0_82] : memref<2x8x8xf32, #tpu.memory_space<vmem>>, vector<1x8x8xf32>
    %337 = vector.shape_cast %336 : vector<1x8x8xf32> to vector<8x8xf32>
    %338 = vector.shape_cast %335 : vector<8x8xf32> to vector<1x8x8xf32>
    tpu.vector_store %arg13[%c1_80, %c0_81, %c0_82], %338 {strides = array<i32>} : memref<2x8x8xf32, #tpu.memory_space<vmem>>, vector<1x8x8xf32>,
    %cst_83 = arith.constant dense<0.000000e+00> : vector<8x32xf32>
    %339 = tpu.matmul %335, %324, %cst_83 {dimension_numbers = #tpu.dot_dimension_numbers<[1], [0], [0], [1], [0, 0, 1, 1], [], []>} : vector<8x8xf32>, vector<8x32xf32>, vector<8x32xf32> -> vector<8x32xf32>
    %cst_84 = arith.constant dense<0.000000e+00> : vector<8x128xf32>
    %340 = tpu.matmul %322, %273, %cst_84 {dimension_numbers = #tpu.dot_dimension_numbers<[1], [0], [0], [1], [0, 0, 1, 1], [], []>} : vector<8x32xf32>, vector<32x128xf32>, vector<8x128xf32> -> vector<8x128xf32>
    %cst_85 = arith.constant dense<0.000000e+00> : vector<8x128xf32>
    %341 = tpu.matmul %339, %274, %cst_85 {dimension_numbers = #tpu.dot_dimension_numbers<[1], [0], [0], [1], [0, 0, 1, 1], [], []>} : vector<8x32xf32>, vector<32x128xf32>, vector<8x128xf32> -> vector<8x128xf32>
    %342 = arith.addf %340, %341 : vector<8x128xf32>
    %343 = vector.broadcast %275 : vector<1x128xf32> to vector<8x128xf32>
    %344 = arith.addf %342, %343 : vector<8x128xf32>
    %c1_86 = arith.constant 1 : index
    %c0_87 = arith.constant 0 : index
    %c0_88 = arith.constant 0 : index
    %345 = vector.load %arg11[%c1_86, %c0_87, %c0_88] : memref<2x8x128xf32, #tpu.memory_space<vmem>>, vector<1x8x128xf32>
    %346 = vector.shape_cast %345 : vector<1x8x128xf32> to vector<8x128xf32>
    %347 = vector.shape_cast %344 : vector<8x128xf32> to vector<1x8x128xf32>
    tpu.vector_store %arg11[%c1_86, %c0_87, %c0_88], %347 {strides = array<i32>} : memref<2x8x128xf32, #tpu.memory_space<vmem>>, vector<1x8x128xf32>,
    %348 = vector.extract_strided_slice %272 {offsets = [1, 0], sizes = [1, 32], strides = [1, 1]} : vector<2x32xf32> to vector<1x32xf32>
    %c1_89 = arith.constant 1 : index
    %c0_90 = arith.constant 0 : index
    %c0_91 = arith.constant 0 : index
    %349 = vector.load %arg12[%c1_89, %c0_90, %c0_91] : memref<2x1x32xf32, #tpu.memory_space<vmem>>, vector<1x1x32xf32>
    %350 = vector.shape_cast %349 : vector<1x1x32xf32> to vector<1x32xf32>
    %351 = vector.shape_cast %348 : vector<1x32xf32> to vector<1x1x32xf32>
    tpu.vector_store %arg12[%c1_89, %c0_90, %c0_91], %351 {strides = array<i32>} : memref<2x1x32xf32, #tpu.memory_space<vmem>>, vector<1x1x32xf32>,
    return
  }
  func.func @transform_0(%arg0: i32) -> (i32, i32, i32) {
    %c0_i32 = arith.constant 0 : i32
    %c0_i32_0 = arith.constant 0 : i32
    %c0_i32_1 = arith.constant 0 : i32
    return %arg0, %c0_i32, %c0_i32_0 : i32, i32, i32
  }
  func.func @transform_1(%arg0: i32) -> (i32, i32, i32) {
    %c0_i32 = arith.constant 0 : i32
    %c0_i32_0 = arith.constant 0 : i32
    %c0_i32_1 = arith.constant 0 : i32
    return %arg0, %c0_i32, %c0_i32_0 : i32, i32, i32
  }
  func.func @transform_2(%arg0: i32) -> (i32, i32, i32) {
    %c0_i32 = arith.constant 0 : i32
    %c0_i32_0 = arith.constant 0 : i32
    %c0_i32_1 = arith.constant 0 : i32
    return %arg0, %c0_i32, %c0_i32_0 : i32, i32, i32
  }
  func.func @transform_3(%arg0: i32) -> (i32, i32) {
    %c0_i32 = arith.constant 0 : i32
    %c0_i32_0 = arith.constant 0 : i32
    %c0_i32_1 = arith.constant 0 : i32
    return %c0_i32, %c0_i32_0 : i32, i32
  }
  func.func @transform_4(%arg0: i32) -> (i32, i32) {
    %c0_i32 = arith.constant 0 : i32
    %c0_i32_0 = arith.constant 0 : i32
    %c0_i32_1 = arith.constant 0 : i32
    return %c0_i32, %c0_i32_0 : i32, i32
  }
  func.func @transform_5(%arg0: i32) -> (i32, i32) {
    %c0_i32 = arith.constant 0 : i32
    %c0_i32_0 = arith.constant 0 : i32
    %c0_i32_1 = arith.constant 0 : i32
    return %c0_i32, %c0_i32_0 : i32, i32
  }
  func.func @transform_6(%arg0: i32) -> (i32, i32) {
    %c0_i32 = arith.constant 0 : i32
    %c0_i32_0 = arith.constant 0 : i32
    %c0_i32_1 = arith.constant 0 : i32
    return %c0_i32, %c0_i32_0 : i32, i32
  }
  func.func @transform_7(%arg0: i32) -> (i32, i32) {
    %c0_i32 = arith.constant 0 : i32
    %c0_i32_0 = arith.constant 0 : i32
    %c0_i32_1 = arith.constant 0 : i32
    return %c0_i32, %c0_i32_0 : i32, i32
  }
  func.func @transform_8(%arg0: i32) -> (i32, i32) {
    %c0_i32 = arith.constant 0 : i32
    %c0_i32_0 = arith.constant 0 : i32
    %c0_i32_1 = arith.constant 0 : i32
    return %c0_i32, %c0_i32_0 : i32, i32
  }
  func.func @transform_9(%arg0: i32) -> (i32, i32) {
    %c0_i32 = arith.constant 0 : i32
    %c0_i32_0 = arith.constant 0 : i32
    %c0_i32_1 = arith.constant 0 : i32
    return %c0_i32, %c0_i32_0 : i32, i32
  }
  func.func @transform_10(%arg0: i32) -> (i32, i32, i32) {
    %c0_i32 = arith.constant 0 : i32
    %c0_i32_0 = arith.constant 0 : i32
    %c0_i32_1 = arith.constant 0 : i32
    return %arg0, %c0_i32, %c0_i32_0 : i32, i32, i32
  }
  func.func @transform_11(%arg0: i32) -> (i32, i32, i32) {
    %c0_i32 = arith.constant 0 : i32
    %c0_i32_0 = arith.constant 0 : i32
    %c0_i32_1 = arith.constant 0 : i32
    return %arg0, %c0_i32, %c0_i32_0 : i32, i32, i32
  }
  func.func @transform_12(%arg0: i32) -> (i32, i32, i32) {
    %c0_i32 = arith.constant 0 : i32
    %c0_i32_0 = arith.constant 0 : i32
    %c0_i32_1 = arith.constant 0 : i32
    return %arg0, %c0_i32, %c0_i32_0 : i32, i32, i32
  }
}

</mosaic_0001>

<bundles_post_ra>
// kernel: tpu_custom_call.1
= control target key start
LH: loop header
LB: loop body
LE: loop exit
PB: predicated region body
PF: predicated region fallthrough
CT: control target
= control target key end

     0   :  { %18 = vsyncpa [#allocation3], 0  ;;  %s2963_s0 = inlined_call_operand.hbm [shape: f32[2,8,32], index: 0, kind: input, shape index: {}]   ;;  %s2964_s1 = inlined_call_operand.hbm [shape: f32[2,8,32], index: 1, kind: input, shape index: {}]   ;;  %s2965_s2 = inlined_call_operand.vmem [shape: f32[2,1,32], index: 2, kind: input, shape index: {}]   ;;  %s2966_s3 = inlined_call_operand.hbm [shape: f32[32,96], index: 3, kind: input, shape index: {}]   ;;  %s2967_s4 = inlined_call_operand.hbm [shape: f32[32,96], index: 4, kind: input, shape index: {}]   ;;  %s2968_s5 = inlined_call_operand.vmem [shape: f32[1,96], index: 5, kind: input, shape index: {}]   ;;  %s2969_s6 = inlined_call_operand.vmem [shape: f32[1,96], index: 6, kind: input, shape index: {}]   ;;  %s2970_s7 = inlined_call_operand.hbm [shape: f32[32,128], index: 7, kind: input, shape index: {}]   ;;  %s2971_s8 = inlined_call_operand.hbm [shape: f32[32,128], index: 8, kind: input, shape index: {}]   ;;  %s2972_s9 = inlined_call_operand.vmem [shape: f32[1,128], index: 9, kind: input, shape index: {}]   ;;  %s2973_s10 = inlined_call_operand.hbm [shape: f32[2,8,128], index: 10, kind: output, shape index: {0}]   ;;  %s2974_s11 = inlined_call_operand.hbm [shape: f32[2,1,32], index: 11, kind: output, shape index: {1}]   ;;  %s2975_s12 = inlined_call_operand.hbm [shape: f32[2,8,8], index: 12, kind: output, shape index: {2}]  }
   0x1   :  { %19 = vsyncpa [#allocation6], 0 }
   0x2   :  { %20 = vsyncpa [#allocation9], 0 }
   0x3   :  { %21 = vsyncpa [#allocation12], 0 }
   0x4   :  { %22 = vsyncpa [#allocation4], 0 }
   0x5   :  { %23 = vsyncpa [#allocation15], 0  ;;  %s2467_s21 = smov [#allocation5]   ;;  %s2468_s23 = smov [#allocation8]  }
   0x6   :  { %s41_s22 = sshll.u32 %s2467_s21, 4  ;;  %s67_s24 = sshll.u32 %s2468_s23, 4  ;;  %s42_s22 = int_to_ptr.vmem [resolvable:$true] %s41_s22  ;;  %s2551_s24 = int_to_ptr.vmem [resolvable:$true] %s67_s24 }
   0x7   :  { %s2257_s27 = scalar_lea.hbm %s2964_s1, 256 }
   0x8   :  { %p2258_p0 = scmp.ne.s32.totalorder %s2964_s1, %s2257_s27  ;;  %p2261_p1 = scmp.lt.u32.totalorder %s2257_s27, %s2964_s1 }
   0xa   :  { %p2263_p2 = pnand %p2261_p1, %p2258_p0 }
   0xc   :  { %2266 = shalt.err (!%p2263_p2)
}
   0xd   :  { %s2267_s14 = scalar_lea.vmem %s42_s22, 256  ;;  %p2272_p4 = scmp.lt.s32.totalorder %s42_s22, %s42_s22 }
   0xe   :  { %p2268_p3 = scmp.ne.s32.totalorder %s42_s22, %s2267_s14  ;;  %p2273_p5 = scmp.lt.s32.totalorder %s2267_s14, %s2267_s14 }
  0x10   :  { %p2274_p6 = por %p2273_p5, %p2272_p4 }
  0x12   :  { %p2275_p7 = pnand %p2274_p6, %p2268_p3 }
  0x14   :  { %2278 = shalt.err (!%p2275_p7)
}
  0x15   :  { %s2469_s15 = smov 128   ;;  %s2470_s16 = smov 8  }
  0x16   :  { %47 = dma.hbm_to_vmem [thread:$0]  %s2964_s1, 256, %s42_s22, [#allocation6], %s2469_s15, %s2469_s15, %s2470_s16  }
  0x17   :  { %s2279_s21 = scalar_lea.hbm %s2967_s4, 512 }
  0x18   :  { %p2280_p8 = scmp.ne.s32.totalorder %s2967_s4, %s2279_s21  ;;  %p2283_p9 = scmp.lt.u32.totalorder %s2279_s21, %s2967_s4 }
  0x1a   :  { %p2285_p10 = pnand %p2283_p9, %p2280_p8 }
  0x1c   :  { %2288 = shalt.err (!%p2285_p10)
}
  0x1d   :  { %s2289_s28 = scalar_lea.vmem %s2551_s24, 512  ;;  %p2294_p12 = scmp.lt.s32.totalorder %s2551_s24, %s2551_s24 }
  0x1e   :  { %p2290_p11 = scmp.ne.s32.totalorder %s2551_s24, %s2289_s28  ;;  %p2295_p13 = scmp.lt.s32.totalorder %s2289_s28, %s2289_s28 }
  0x20   :  { %p2296_p0 = por %p2295_p13, %p2294_p12 }
  0x22   :  { %p2297_p1 = pnand %p2296_p0, %p2290_p11 }
  0x24   :  { %2300 = shalt.err (!%p2297_p1)
}
  0x25   :  { %73 = dma.hbm_to_vmem [thread:$0]  %s2967_s4, 512, %s2551_s24, [#allocation9], %s2469_s15, %s2469_s15, %s2470_s16  }
  0x26   :  { %s2471_s29 = smov [#allocation2]   ;;  %s2472_s13 = smov [#allocation7]  }
  0x27   :  { %s29_s30 = sshll.u32 %s2471_s29, 4  ;;  %s55_s14 = sshll.u32 %s2472_s13, 4  ;;  %s30_s30 = int_to_ptr.vmem [resolvable:$true] %s29_s30  ;;  %s2588_s14 = int_to_ptr.vmem [resolvable:$true] %s55_s14 }
  0x28   :  { %s2301_s19 = scalar_lea.hbm %s2963_s0, 256 }
  0x29   :  { %p2302_p2 = scmp.ne.s32.totalorder %s2963_s0, %s2301_s19  ;;  %p2305_p3 = scmp.lt.u32.totalorder %s2301_s19, %s2963_s0 }
  0x2b   :  { %p2307_p4 = pnand %p2305_p3, %p2302_p2 }
  0x2d   :  { %2310 = shalt.err (!%p2307_p4)
}
  0x2e   :  { %s2311_s4 = scalar_lea.vmem %s30_s30, 256  ;;  %p2316_p6 = scmp.lt.s32.totalorder %s30_s30, %s30_s30 }
  0x2f   :  { %p2312_p5 = scmp.ne.s32.totalorder %s30_s30, %s2311_s4  ;;  %p2317_p7 = scmp.lt.s32.totalorder %s2311_s4, %s2311_s4 }
  0x31   :  { %p2318_p8 = por %p2317_p7, %p2316_p6 }
  0x33   :  { %p2319_p9 = pnand %p2318_p8, %p2312_p5 }
  0x35   :  { %2322 = shalt.err (!%p2319_p9)
}
  0x36   :  { %35 = dma.hbm_to_vmem [thread:$0]  %s2963_s0, 256, %s30_s30, [#allocation3], %s2469_s15, %s2469_s15, %s2470_s16  }
  0x37   :  { %s2323_s1 = scalar_lea.hbm %s2966_s3, 512 }
  0x38   :  { %p2324_p10 = scmp.ne.s32.totalorder %s2966_s3, %s2323_s1  ;;  %p2327_p11 = scmp.lt.u32.totalorder %s2323_s1, %s2966_s3 }
  0x3a   :  { %p2329_p12 = pnand %p2327_p11, %p2324_p10 }
  0x3c   :  { %2332 = shalt.err (!%p2329_p12)
}
  0x3d   :  { %s2333_s18 = scalar_lea.vmem %s2588_s14, 512  ;;  %p2338_p0 = scmp.lt.s32.totalorder %s2588_s14, %s2588_s14 }
  0x3e   :  { %p2334_p13 = scmp.ne.s32.totalorder %s2588_s14, %s2333_s18  ;;  %p2339_p1 = scmp.lt.s32.totalorder %s2333_s18, %s2333_s18 }
  0x40   :  { %p2340_p2 = por %p2339_p1, %p2338_p0 }
  0x42   :  { %p2341_p3 = pnand %p2340_p2, %p2334_p13 }
  0x44   :  { %2344 = shalt.err (!%p2341_p3)
}
  0x45   :  { %61 = dma.hbm_to_vmem [thread:$0]  %s2966_s3, 512, %s2588_s14, [#allocation6], %s2469_s15, %s2469_s15, %s2470_s16  }
  0x46   :  { %s2473_s19 = smov [#allocation10]   ;;  %s2474_s21 = smov [#allocation11]  }
  0x47   :  { %s83_s20 = sshll.u32 %s2473_s19, 4  ;;  %s95_s23 = sshll.u32 %s2474_s21, 4  ;;  %s84_s20 = int_to_ptr.vmem [resolvable:$true] %s83_s20  ;;  %s2625_s23 = int_to_ptr.vmem [resolvable:$true] %s95_s23 }
  0x48   :  { %s2345_s24 = scalar_lea.hbm %s2970_s7, 512 }
  0x49   :  { %p2346_p4 = scmp.ne.s32.totalorder %s2970_s7, %s2345_s24  ;;  %p2349_p5 = scmp.lt.u32.totalorder %s2345_s24, %s2970_s7 }
  0x4b   :  { %p2351_p6 = pnand %p2349_p5, %p2346_p4 }
  0x4d   :  { %2354 = shalt.err (!%p2351_p6)
}
  0x4e   :  { %s2355_s3 = scalar_lea.vmem %s84_s20, 512  ;;  %p2360_p8 = scmp.lt.s32.totalorder %s84_s20, %s84_s20 }
  0x4f   :  { %p2356_p7 = scmp.ne.s32.totalorder %s84_s20, %s2355_s3  ;;  %p2361_p9 = scmp.lt.s32.totalorder %s2355_s3, %s2355_s3 }
  0x51   :  { %p2362_p10 = por %p2361_p9, %p2360_p8 }
  0x53   :  { %p2363_p11 = pnand %p2362_p10, %p2356_p7 }
  0x55   :  { %2366 = shalt.err (!%p2363_p11)
}
  0x56   :  { %89 = dma.hbm_to_vmem [thread:$0]  %s2970_s7, 512, %s84_s20, [#allocation9], %s2469_s15, %s2469_s15, %s2470_s16  }
  0x57   :  { %s2367_s17 = scalar_lea.hbm %s2971_s8, 512 }
  0x58   :  { %p2368_p12 = scmp.ne.s32.totalorder %s2971_s8, %s2367_s17  ;;  %p2371_p13 = scmp.lt.u32.totalorder %s2367_s17, %s2971_s8 }
  0x5a   :  { %p2373_p0 = pnand %p2371_p13, %p2368_p12 }
  0x5c   :  { %2376 = shalt.err (!%p2373_p0)
}
  0x5d   :  { %s2377_s21 = scalar_lea.vmem %s2625_s23, 512  ;;  %p2382_p2 = scmp.lt.s32.totalorder %s2625_s23, %s2625_s23 }
  0x5e   :  { %p2378_p1 = scmp.ne.s32.totalorder %s2625_s23, %s2377_s21  ;;  %p2383_p3 = scmp.lt.s32.totalorder %s2377_s21, %s2377_s21 }
  0x60   :  { %p2384_p4 = por %p2383_p3, %p2382_p2 }
  0x62   :  { %p2385_p5 = pnand %p2384_p4, %p2378_p1 }
  0x64   :  { %2388 = shalt.err (!%p2385_p5)
}
  0x65   :  { %101 = dma.hbm_to_vmem [thread:$0]  %s2971_s8, 512, %s2625_s23, [#allocation12], %s2469_s15, %s2469_s15, %s2470_s16  }
  0x66   :  { %2455 = dma.done.wait [#allocation3], 256  }
  0x67   :  { %2456 = vsyncadd [#allocation3], 4294967040 }
  0x68   :  { %2457 = dma.done.wait [#allocation6], 768  }
  0x69   :  { %2458 = vsyncadd [#allocation6], 4294966528 }
  0x6a   :  { %2459 = dma.done.wait [#allocation9], 1024  }
  0x6b   :  { %2460 = vsyncadd [#allocation9], 4294966272 }
  0x6c   :  { %2461 = dma.done.wait [#allocation12], 512  }
  0x6d   :  { %2462 = vsyncadd [#allocation12], 4294966784  ;;  %v2475_v0 = vmov 0.0|0.0   ;;  %vm2476_vm0 = vmmov 0   ;;  %v2477_v1 = vmov 0.0   ;;  %v122_v2 = vld [vmem:[#allocation7] sm:$0xff] }
  0x6e   :  { %2110 = vmatprep.subr.bf16.mxu1 %v2475_v0  ;;  %1958 = vmatprep.mubr.msk.f32.mxu1 %vm2476_vm0, %v2477_v1  ;;  %v123_v3 = vld [vmem:[#allocation7 + $0x8] sm:$0xff]  ;;  %v126_v4 = vld [vmem:[#allocation8] sm:$0xff]  ;;  %vm141_vm1 = vcmask 261120   ;;  %v124_v7 = vld [vmem:[#allocation7 + $0x10] sm:$0xff]  ;;  %vm226_vm2 = vcmask 1040384   ;;  %s2478_s28 = smov 64  }
  0x6f   :  { %v2102_v5 = vpack.c.bf16 %v123_v3, %v122_v2  ;;  %v127_v6 = vld [vmem:[#allocation8 + $0x8] sm:$0xff]  ;;  %v125_v8 = vld [vmem:[#allocation7 + $0x18] sm:$0xff]  ;;  %v128_v11 = vld [vmem:[#allocation8 + $0x10] sm:$0xff]  ;;  %vm1112_vm3 = vcmask 1041408   ;;  %vm1114_vm4 = vcmask 1042432   ;;  %vm1116_vm5 = vcmask 1043456  }
  0x70   :  { %v2665_v9 = vpack.c.bf16 %v127_v6, %v126_v4  ;;  %v2106_v10 = vpack.c.bf16 %v125_v8, %v124_v7  ;;  %v129_v12 = vld [vmem:[#allocation8 + $0x18] sm:$0xff]  ;;  %v132_v13 = vld [vmem:[#allocation2] sm:$0xff]  ;;  %v134_v18 = vld [vmem:[#allocation2 + $0x8] sm:$0xff]  ;;  %vm1118_vm6 = vcmask 1044480   ;;  %vm1120_vm7 = vcmask 1045504  }
  0x71   :  { %2103 = vmatprep.subr.bf16.mxu0 %v2102_v5  ;;  %1947 = vmatprep.mubr.msk.f32.mxu0 %vm141_vm1, %v132_v13  ;;  %v2669_v14 = vpack.c.bf16 %v129_v12, %v128_v11  ;;  %v262_v15 = vld [vmem:[%s2965_s2] sm:$0x1]  ;;  %v1836_v16 = vld [vmem:[%s2965_s2 + $0x1] ss:$0 sm:$0xff]  ;;  %vm1122_vm8 = vcmask 1046528   ;;  %vm1203_vm9 = vcmask 64512  }
  0x72   :  { %2112 = vmatpush3.bf16.msra.mxu1 %v2665_v9  ;;  %2105 = vmatpush3.bf16.msra.mxu0 %v2102_v5  ;;  %v2680_v17 = vsel %vm226_vm2, %v262_v15, %v1836_v16  ;;  %v2702_v19 = vld [vmem:[%s2969_s6] ss:$0 sm:$0xff]  ;;  %s2480_s6 = smov 32   ;;  %vm1443_vm10 = vcmask 253952   ;;  %vm1779_vm11 = vcmask 254977  }
  0x73   :  { %2113 = vmatprep.subr.bf16.mxu1 %v2475_v0  ;;  %2107 = vmatprep.subr.bf16.mxu0 %v2106_v10  ;;  %v1832_v20 = vld [vmem:[%s2968_s5] ss:$0 sm:$0xff]  ;;  %s2479_s5 = smov 96  }
  0x76   :  { %2115 = vmatpush3.bf16.msra.mxu1 %v2669_v14  ;;  %2109 = vmatpush3.bf16.msra.mxu0 %v2106_v10 }
  0x77   :  { %2116 = vmatprep.subr.bf16.mxu0 %v2475_v0  ;;  %2122 = vmatprep.subr.bf16.mxu1 %v2475_v0 }
  0x79   :  { %1959 = vmatmul.mubr.msk.f32.vlgmr.msra.gmra.mrb[0].mxu1 %vm141_vm1, %v2680_v17  ;;  %1948 = vmatmul.mubr.msk.f32.vlgmr.msra.gmra.mrb[0].mxu0 %vm141_vm1, %v134_v18 }
  0x7a   :  { %2118 = vmatpush3.bf16.msra.mxu0 %v2665_v9  ;;  %1969 = vmatprep.mubr.msk.f32.mxu0 %vm2476_vm0, %v2477_v1 }
  0x7b   :  { %2119 = vmatprep.subr.bf16.mxu0 %v2475_v0  ;;  %2124 = vmatpush3.bf16.msra.mxu1 %v2665_v9 }
  0x7c   :  { %2125 = vmatprep.subr.bf16.mxu1 %v2475_v0  ;;  %1980 = vmatprep.mubr.msk.f32.mxu1 %vm2476_vm0, %v2477_v1 }
  0x7e   :  { %2121 = vmatpush3.bf16.msra.mxu0 %v2669_v14 }
  0x7f   :  { %2127 = vmatpush3.bf16.msra.mxu1 %v2669_v14  ;;  %2128 = vmatprep.subr.bf16.mxu0 %v2475_v0 }
  0x80   :  { %2134 = vmatprep.subr.bf16.mxu1 %v2475_v0 }
 0x14c   :  { %v347_v21 = vpop.f32.mrb[0].mxu1  ;;  %v1949_v22 = vpop.f32.mrb[0].mxu0 }
 0x14d   :  { %v348_v23 = vadd.f32 %v2702_v19, %v347_v21  ;;  %v220_v24 = vadd.f32 %v1949_v22, %v1832_v20  ;;  %v1960_v25 = vpop.f32.mrb[1].mxu1  ;;  %v214_v26 = vpop.f32.mrb[1].mxu0 }
 0x14e   :  { %v215_v27 = vadd.f32 %v1832_v20, %v214_v26 }
 0x14f   :  { %v224_v28 = vrot.slane %v220_v24, 7  ;;  %359 = vrot.lane.b32.xlu0 %v348_v23, %s2478_s28  ;;  %v234_v29 = vrot.slane %v220_v24, 1  ;;  %v239_v30 = vrot.slane %v220_v24, 2  ;;  %v244_v31 = vrot.slane %v220_v24, 3 }
 0x150   :  { %v229_v32 = vrot.slane %v215_v27, 1  ;;  %v232_v33 = vrot.slane %v215_v27, 2  ;;  %v237_v34 = vrot.slane %v215_v27, 3  ;;  %v242_v35 = vrot.slane %v215_v27, 4 }
 0x151   :  { %v227_v36 = vsel %vm226_vm2, %v215_v27, %v224_v28  ;;  %v247_v37 = vrot.slane %v215_v27, 5  ;;  %v249_v38 = vrot.slane %v220_v24, 4  ;;  %v252_v39 = vrot.slane %v215_v27, 6 }
 0x152   :  { %v231_v40 = vsel %vm226_vm2, %v229_v32, %v220_v24  ;;  %v2712_v41 = vsel %vm226_vm2, %v232_v33, %v234_v29  ;;  %v2715_v42 = vsel %vm226_vm2, %v237_v34, %v239_v30  ;;  %v2718_v43 = vsel %vm226_vm2, %v242_v35, %v244_v31 }
 0x153   :  { %v2721_v44 = vsel %vm226_vm2, %v247_v37, %v249_v38  ;;  %v254_v45 = vrot.slane %v220_v24, 5  ;;  %v257_v46 = vrot.slane %v215_v27, 7  ;;  %v259_v47 = vrot.slane %v220_v24, 6 }
 0x154   :  { %v351_v50 = vadd.f32 %v348_v23, %v227_v36 }
 0x155   :  { %v2724_v48 = vsel %vm226_vm2, %v252_v39, %v254_v45  ;;  %v2727_v49 = vsel %vm226_vm2, %v257_v46, %v259_v47 }
 0x156   :  { %v1839_v51 = vmul.f32 -1.442695, %v351_v50 }
 0x158   :  { %2201 = vpow2.f32 %v1839_v51 }
 0x162   :  { %v2202_v52 = vpop.eup %2201 }
 0x163   :  { %v355_v53 = vadd.f32 1.0, %v2202_v52 }
 0x165   :  { %2203 = vrcp.f32 %v355_v53 }
 0x16f   :  { %v2204_v54 = vpop.eup %2203 }
 0x170   :  { %v369_v61 = vsub.f32 1.0, %v2204_v54 }
 0x1c1   :  { %v360_v55 = vpop.permute.xlu0 %359 }
 0x1c2   :  { %v362_v56 = vmul.f32 %v2204_v54, %v360_v55 }
 0x1c4   :  { %364 = vrot.lane.b32.xlu0 %v362_v56, %s2478_s28 }
 0x236   :  { %v365_v57 = vpop.permute.xlu0 %364 }
 0x237   :  { %v367_v58 = vadd.f32 %v365_v57, %v227_v36 }
 0x239   :  { %2205 = vtanh.f32 %v367_v58 }
 0x243   :  { %v2206_v59 = vpop.eup %2205 }
 0x244   :  { %371 = vrot.lane.b32.xlu1 %v2206_v59, %s2479_s5 }
 0x248   :  { %375 = vrot.lane.b32.xlu1 %v2680_v17, %s2480_s6 }
 0x2b6   :  { %v372_v60 = vpop.permute.xlu1 %371 }
 0x2b7   :  { %v374_v63 = vmul.f32 %v372_v60, %v369_v61 }
 0x2ba   :  { %v376_v62 = vpop.permute.xlu1 %375 }
 0x2bb   :  { %v378_v2 = vmul.f32 %v2204_v54, %v376_v62 }
 0x2bd   :  { %v2732_v3 = vadd.f32 %v378_v2, %v374_v63 }
 0x2bf   :  { %381 = vrot.lane.b32.xlu0 %v2732_v3, %s2479_s5 }
 0x331   :  { %v382_v4 = vpop.permute.xlu0 %381 }
 0x332   :  { %1970 = vmatmul.mubr.msk.f32.vlgmr.msra.gmra.mrb[2].mxu0 %vm141_vm1, %v382_v4 }
 0x333   :  { %2130 = vmatpush3.bf16.msra.mxu0 %v2665_v9  ;;  %1991 = vmatprep.mubr.msk.f32.mxu0 %vm2476_vm0, %v2477_v1 }
 0x334   :  { %2131 = vmatprep.subr.bf16.mxu0 %v2475_v0 }
 0x337   :  { %2133 = vmatpush3.bf16.msra.mxu0 %v2669_v14 }
 0x338   :  { %2140 = vmatprep.subr.bf16.mxu0 %v2475_v0 }
 0x405   :  { %v451_v5 = vpop.f32.mrb[2].mxu0 }
 0x406   :  { %v452_v6 = vadd.f32 %v2702_v19, %v451_v5  ;;  %v1971_v7 = vpop.f32.mrb[3].mxu0 }
 0x408   :  { %463 = vrot.lane.b32.xlu1 %v452_v6, %s2478_s28  ;;  %v455_v8 = vadd.f32 %v452_v6, %v231_v40 }
 0x40a   :  { %v1841_v10 = vmul.f32 -1.442695, %v455_v8  ;;  %v1445_v8 = vrot.slane %v2732_v3, 1 }
 0x40c   :  { %2207 = vpow2.f32 %v1841_v10 }
 0x416   :  { %v2208_v11 = vpop.eup %2207 }
 0x417   :  { %v459_v12 = vadd.f32 1.0, %v2208_v11 }
 0x419   :  { %2209 = vrcp.f32 %v459_v12 }
 0x423   :  { %v2210_v13 = vpop.eup %2209 }
 0x424   :  { %v473_v21 = vsub.f32 1.0, %v2210_v13  ;;  %v479_v23 = vmul.f32 %v2210_v13, %v2732_v3 }
 0x47a   :  { %v464_v15 = vpop.permute.xlu1 %463 }
 0x47b   :  { %v466_v16 = vmul.f32 %v2210_v13, %v464_v15 }
 0x47d   :  { %468 = vrot.lane.b32.xlu0 %v466_v16, %s2478_s28 }
 0x4ef   :  { %v469_v17 = vpop.permute.xlu0 %468 }
 0x4f0   :  { %v471_v18 = vadd.f32 %v469_v17, %v231_v40 }
 0x4f2   :  { %2211 = vtanh.f32 %v471_v18 }
 0x4fc   :  { %v2212_v20 = vpop.eup %2211 }
 0x4fd   :  { %475 = vrot.lane.b32.xlu1 %v2212_v20, %s2479_s5 }
 0x56f   :  { %v476_v22 = vpop.permute.xlu1 %475 }
 0x570   :  { %v478_v24 = vmul.f32 %v476_v22, %v473_v21 }
 0x572   :  { %v2748_v25 = vadd.f32 %v479_v23, %v478_v24 }
 0x574   :  { %482 = vrot.lane.b32.xlu0 %v2748_v25, %s2479_s5 }
 0x5e6   :  { %v483_v26 = vpop.permute.xlu0 %482 }
 0x5e7   :  { %1981 = vmatmul.mubr.msk.f32.vlgmr.msra.gmra.mrb[2].mxu1 %vm141_vm1, %v483_v26 }
 0x5e8   :  { %2136 = vmatpush3.bf16.msra.mxu1 %v2665_v9  ;;  %2002 = vmatprep.mubr.msk.f32.mxu1 %vm2476_vm0, %v2477_v1 }
 0x5e9   :  { %2137 = vmatprep.subr.bf16.mxu1 %v2475_v0 }
 0x5ec   :  { %2139 = vmatpush3.bf16.msra.mxu1 %v2669_v14 }
 0x5ed   :  { %2146 = vmatprep.subr.bf16.mxu1 %v2475_v0 }
 0x6ba   :  { %v552_v27 = vpop.f32.mrb[2].mxu1 }
 0x6bb   :  { %v553_v28 = vadd.f32 %v2702_v19, %v552_v27  ;;  %v1982_v29 = vpop.f32.mrb[3].mxu1 }
 0x6bd   :  { %564 = vrot.lane.b32.xlu1 %v553_v28, %s2478_s28  ;;  %v556_v30 = vadd.f32 %v553_v28, %v2712_v41 }
 0x6bf   :  { %v1843_v31 = vmul.f32 -1.442695, %v556_v30 }
 0x6c1   :  { %2213 = vpow2.f32 %v1843_v31 }
 0x6cb   :  { %v2214_v32 = vpop.eup %2213 }
 0x6cc   :  { %v560_v33 = vadd.f32 1.0, %v2214_v32 }
 0x6ce   :  { %2215 = vrcp.f32 %v560_v33 }
 0x6d8   :  { %v2216_v34 = vpop.eup %2215 }
 0x6d9   :  { %v574_v40 = vsub.f32 1.0, %v2216_v34  ;;  %v580_v46 = vmul.f32 %v2216_v34, %v2748_v25 }
 0x72f   :  { %v565_v35 = vpop.permute.xlu1 %564 }
 0x730   :  { %v567_v36 = vmul.f32 %v2216_v34, %v565_v35 }
 0x732   :  { %569 = vrot.lane.b32.xlu0 %v567_v36, %s2478_s28 }
 0x7a4   :  { %v570_v37 = vpop.permute.xlu0 %569 }
 0x7a5   :  { %v572_v38 = vadd.f32 %v570_v37, %v2712_v41 }
 0x7a7   :  { %2217 = vtanh.f32 %v572_v38 }
 0x7b1   :  { %v2218_v39 = vpop.eup %2217 }
 0x7b2   :  { %576 = vrot.lane.b32.xlu1 %v2218_v39, %s2479_s5 }
 0x824   :  { %v577_v45 = vpop.permute.xlu1 %576 }
 0x825   :  { %v579_v47 = vmul.f32 %v577_v45, %v574_v40 }
 0x827   :  { %v2766_v50 = vadd.f32 %v580_v46, %v579_v47 }
 0x829   :  { %583 = vrot.lane.b32.xlu0 %v2766_v50, %s2479_s5  ;;  %v1447_v7 = vrot.slane %v2766_v50, 7 }
 0x89b   :  { %v584_v51 = vpop.permute.xlu0 %583 }
 0x89c   :  { %1992 = vmatmul.mubr.msk.f32.vlgmr.msra.gmra.mrb[4].mxu0 %vm141_vm1, %v584_v51 }
 0x89d   :  { %2142 = vmatpush3.bf16.msra.mxu0 %v2665_v9  ;;  %2013 = vmatprep.mubr.msk.f32.mxu0 %vm2476_vm0, %v2477_v1 }
 0x89e   :  { %2143 = vmatprep.subr.bf16.mxu0 %v2475_v0 }
 0x8a1   :  { %2145 = vmatpush3.bf16.msra.mxu0 %v2669_v14 }
 0x8a2   :  { %2152 = vmatprep.subr.bf16.mxu0 %v2475_v0 }
 0x96f   :  { %v653_v41 = vpop.f32.mrb[4].mxu0 }
 0x970   :  { %v654_v52 = vadd.f32 %v2702_v19, %v653_v41  ;;  %v1993_v53 = vpop.f32.mrb[5].mxu0 }
 0x972   :  { %665 = vrot.lane.b32.xlu1 %v654_v52, %s2478_s28  ;;  %v657_v54 = vadd.f32 %v654_v52, %v2715_v42 }
 0x974   :  { %v1845_v55 = vmul.f32 -1.442695, %v657_v54 }
 0x976   :  { %2219 = vpow2.f32 %v1845_v55 }
 0x980   :  { %v2220_v56 = vpop.eup %2219 }
 0x981   :  { %v661_v57 = vadd.f32 1.0, %v2220_v56 }
 0x983   :  { %2221 = vrcp.f32 %v661_v57 }
 0x98d   :  { %v2222_v58 = vpop.eup %2221 }
 0x98e   :  { %v675_v2 = vsub.f32 1.0, %v2222_v58  ;;  %v681_v5 = vmul.f32 %v2222_v58, %v2766_v50 }
 0x9e4   :  { %v666_v59 = vpop.permute.xlu1 %665 }
 0x9e5   :  { %v668_v60 = vmul.f32 %v2222_v58, %v666_v59 }
 0x9e7   :  { %670 = vrot.lane.b32.xlu0 %v668_v60, %s2478_s28 }
 0xa59   :  { %v671_v61 = vpop.permute.xlu0 %670 }
 0xa5a   :  { %v673_v62 = vadd.f32 %v671_v61, %v2715_v42  ;;  %v1459_v42 = vsel %vm226_vm2, %v1445_v8, %v2748_v25 }
 0xa5b   :  { %v1460_v12 = vsel %vm1112_vm3, %v1459_v42, %v1447_v7 }
 0xa5c   :  { %2223 = vtanh.f32 %v673_v62 }
 0xa66   :  { %v2224_v63 = vpop.eup %2223 }
 0xa67   :  { %677 = vrot.lane.b32.xlu1 %v2224_v63, %s2479_s5 }
 0xad9   :  { %v678_v4 = vpop.permute.xlu1 %677 }
 0xada   :  { %v680_v6 = vmul.f32 %v678_v4, %v675_v2 }
 0xadc   :  { %v2786_v10 = vadd.f32 %v681_v5, %v680_v6 }
 0xade   :  { %v1449_v11 = vrot.slane %v2786_v10, 6  ;;  %684 = vrot.lane.b32.xlu0 %v2786_v10, %s2479_s5 }
 0xae0   :  { %v1461_v13 = vsel %vm1114_vm4, %v1460_v12, %v1449_v11 }
 0xb50   :  { %v685_v15 = vpop.permute.xlu0 %684 }
 0xb51   :  { %2003 = vmatmul.mubr.msk.f32.vlgmr.msra.gmra.mrb[4].mxu1 %vm141_vm1, %v685_v15 }
 0xb52   :  { %2148 = vmatpush3.bf16.msra.mxu1 %v2665_v9  ;;  %2024 = vmatprep.mubr.msk.f32.mxu1 %vm2476_vm0, %v2477_v1 }
 0xb53   :  { %2149 = vmatprep.subr.bf16.mxu1 %v2475_v0 }
 0xb56   :  { %2151 = vmatpush3.bf16.msra.mxu1 %v2669_v14 }
 0xb57   :  { %2038 = vmatprep.subr.mxu1 %v2477_v1 }
 0xc24   :  { %v754_v16 = vpop.f32.mrb[4].mxu1 }
 0xc25   :  { %v755_v17 = vadd.f32 %v2702_v19, %v754_v16  ;;  %v2004_v18 = vpop.f32.mrb[5].mxu1 }
 0xc27   :  { %766 = vrot.lane.b32.xlu1 %v755_v17, %s2478_s28  ;;  %v758_v20 = vadd.f32 %v755_v17, %v2718_v43 }
 0xc29   :  { %v1847_v21 = vmul.f32 -1.442695, %v758_v20 }
 0xc2b   :  { %2225 = vpow2.f32 %v1847_v21 }
 0xc35   :  { %v2226_v22 = vpop.eup %2225 }
 0xc36   :  { %v762_v23 = vadd.f32 1.0, %v2226_v22 }
 0xc38   :  { %2227 = vrcp.f32 %v762_v23 }
 0xc42   :  { %v2228_v24 = vpop.eup %2227 }
 0xc43   :  { %v776_v31 = vsub.f32 1.0, %v2228_v24  ;;  %v782_v33 = vmul.f32 %v2228_v24, %v2786_v10 }
 0xc99   :  { %v767_v26 = vpop.permute.xlu1 %766 }
 0xc9a   :  { %v769_v27 = vmul.f32 %v2228_v24, %v767_v26 }
 0xc9c   :  { %771 = vrot.lane.b32.xlu0 %v769_v27, %s2478_s28 }
 0xd0e   :  { %v772_v28 = vpop.permute.xlu0 %771 }
 0xd0f   :  { %v774_v29 = vadd.f32 %v772_v28, %v2718_v43 }
 0xd11   :  { %2229 = vtanh.f32 %v774_v29 }
 0xd1b   :  { %v2230_v30 = vpop.eup %2229 }
 0xd1c   :  { %778 = vrot.lane.b32.xlu1 %v2230_v30, %s2479_s5 }
 0xd8e   :  { %v779_v32 = vpop.permute.xlu1 %778 }
 0xd8f   :  { %v781_v34 = vmul.f32 %v779_v32, %v776_v31 }
 0xd91   :  { %v2809_v35 = vadd.f32 %v782_v33, %v781_v34 }
 0xd93   :  { %v1451_v36 = vrot.slane %v2809_v35, 5  ;;  %785 = vrot.lane.b32.xlu0 %v2809_v35, %s2479_s5 }
 0xd95   :  { %v1462_v37 = vsel %vm1116_vm5, %v1461_v13, %v1451_v36 }
 0xe05   :  { %v786_v43 = vpop.permute.xlu0 %785 }
 0xe06   :  { %2014 = vmatmul.mubr.msk.f32.vlgmr.msra.gmra.mrb[6].mxu0 %vm141_vm1, %v786_v43 }
 0xe07   :  { %2154 = vmatpush3.bf16.msra.mxu0 %v2665_v9  ;;  %2035 = vmatprep.mubr.msk.f32.mxu0 %vm2476_vm0, %v2477_v1 }
 0xe08   :  { %2155 = vmatprep.subr.bf16.mxu0 %v2475_v0 }
 0xe0b   :  { %2157 = vmatpush3.bf16.msra.mxu0 %v2669_v14 }
 0xe0c   :  { %2158 = vmatprep.subr.bf16.mxu0 %v2475_v0 }
 0xed9   :  { %v855_v38 = vpop.f32.mrb[6].mxu0 }
 0xeda   :  { %v856_v39 = vadd.f32 %v2702_v19, %v855_v38  ;;  %v2015_v40 = vpop.f32.mrb[7].mxu0  ;;  %v1096_v38 = vrot.slane %v2748_v25, 7 }
 0xedb   :  { %v1100_v40 = vrot.slane %v2786_v10, 5 }
 0xedc   :  { %867 = vrot.lane.b32.xlu1 %v856_v39, %s2478_s28  ;;  %v859_v45 = vadd.f32 %v856_v39, %v2721_v44  ;;  %v1098_v39 = vrot.slane %v2766_v50, 6 }
 0xede   :  { %v1849_v46 = vmul.f32 -1.442695, %v859_v45 }
 0xee0   :  { %2231 = vpow2.f32 %v1849_v46  ;;  %v1102_v46 = vrot.slane %v2809_v35, 4 }
 0xeea   :  { %v2232_v9 = vpop.eup %2231 }
 0xeeb   :  { %v863_v47 = vadd.f32 1.0, %v2232_v9 }
 0xeed   :  { %2233 = vrcp.f32 %v863_v47 }
 0xef7   :  { %v2234_v51 = vpop.eup %2233 }
 0xef8   :  { %v877_v55 = vsub.f32 1.0, %v2234_v51  ;;  %v883_v57 = vmul.f32 %v2234_v51, %v2809_v35 }
 0xf4e   :  { %v868_v41 = vpop.permute.xlu1 %867 }
 0xf4f   :  { %v870_v52 = vmul.f32 %v2234_v51, %v868_v41 }
 0xf51   :  { %872 = vrot.lane.b32.xlu0 %v870_v52, %s2478_s28 }
 0xfc3   :  { %v873_v14 = vpop.permute.xlu0 %872 }
 0xfc4   :  { %v875_v53 = vadd.f32 %v873_v14, %v2721_v44 }
 0xfc6   :  { %2235 = vtanh.f32 %v875_v53 }
 0xfd0   :  { %v2236_v54 = vpop.eup %2235 }
 0xfd1   :  { %879 = vrot.lane.b32.xlu1 %v2236_v54, %s2479_s5 }
0x1043   :  { %v880_v56 = vpop.permute.xlu1 %879 }
0x1044   :  { %v882_v58 = vmul.f32 %v880_v56, %v877_v55 }
0x1046   :  { %v2829_v59 = vadd.f32 %v883_v57, %v882_v58 }
0x1048   :  { %v1453_v60 = vrot.slane %v2829_v59, 4  ;;  %886 = vrot.lane.b32.xlu0 %v2829_v59, %s2479_s5  ;;  %v1104_v47 = vrot.slane %v2829_v59, 3 }
0x104a   :  { %v1463_v61 = vsel %vm1118_vm6, %v1462_v37, %v1453_v60 }
0x10ba   :  { %v887_v44 = vpop.permute.xlu0 %886 }
0x10bb   :  { %2025 = vmatmul.mubr.msk.f32.vlgmr.msra.gmra.mrb[6].mxu1 %vm141_vm1, %v887_v44 }
0x10bc   :  { %2040 = vmatprep.mubr.msk.f32.mxu1 %vm2476_vm0, %v2477_v1 }
0x118e   :  { %v956_v62 = vpop.f32.mrb[6].mxu1 }
0x118f   :  { %v957_v63 = vadd.f32 %v2702_v19, %v956_v62  ;;  %v2026_v2 = vpop.f32.mrb[7].mxu1 }
0x1191   :  { %968 = vrot.lane.b32.xlu1 %v957_v63, %s2478_s28  ;;  %v960_v4 = vadd.f32 %v957_v63, %v2724_v48 }
0x1193   :  { %v1851_v5 = vmul.f32 -1.442695, %v960_v4  ;;  %v1091_v4 = vld [vmem:[#allocation11] sm:$0xff] }
0x1195   :  { %2237 = vpow2.f32 %v1851_v5  ;;  %v1092_v5 = vld [vmem:[#allocation11 + $0x8] sm:$0xff] }
0x119f   :  { %v2238_v6 = vpop.eup %2237 }
0x11a0   :  { %v964_v7 = vadd.f32 1.0, %v2238_v6  ;;  %v1093_v6 = vld [vmem:[#allocation11 + $0x10] sm:$0xff] }
0x11a2   :  { %2239 = vrcp.f32 %v964_v7  ;;  %v2159_v7 = vpack.c.bf16 %v1092_v5, %v1091_v4 }
0x11ac   :  { %v2240_v8 = vpop.eup %2239 }
0x11ad   :  { %v978_v16 = vsub.f32 1.0, %v2240_v8  ;;  %v984_v18 = vmul.f32 %v2240_v8, %v2829_v59 }
0x1203   :  { %v969_v42 = vpop.permute.xlu1 %968 }
0x1204   :  { %v971_v11 = vmul.f32 %v2240_v8, %v969_v42  ;;  %v1094_v8 = vld [vmem:[#allocation11 + $0x18] sm:$0xff] }
0x1205   :  { %v2162_v42 = vpack.c.bf16 %v1094_v8, %v1093_v6 }
0x1206   :  { %973 = vrot.lane.b32.xlu0 %v971_v11, %s2478_s28 }
0x1278   :  { %v974_v12 = vpop.permute.xlu0 %973 }
0x1279   :  { %v976_v13 = vadd.f32 %v974_v12, %v2724_v48  ;;  %v1087_v12 = vld [vmem:[#allocation10] sm:$0xff] }
0x127b   :  { %2241 = vtanh.f32 %v976_v13  ;;  %v1088_v13 = vld [vmem:[#allocation10 + $0x8] sm:$0xff] }
0x1285   :  { %v2242_v15 = vpop.eup %2241 }
0x1286   :  { %980 = vrot.lane.b32.xlu1 %v2242_v15, %s2479_s5 }
0x12f8   :  { %v981_v17 = vpop.permute.xlu1 %980 }
0x12f9   :  { %v983_v20 = vmul.f32 %v981_v17, %v978_v16  ;;  %v2165_v16 = vpack.c.bf16 %v1088_v13, %v1087_v12 }
0x12fb   :  { %v985_v21 = vadd.f32 %v984_v18, %v983_v20  ;;  %v1089_v18 = vld [vmem:[#allocation10 + $0x10] sm:$0xff]  ;;  %v1090_v20 = vld [vmem:[#allocation10 + $0x18] sm:$0xff] }
0x12fd   :  { %987 = vrot.lane.b32.xlu0 %v985_v21, %s2479_s5  ;;  %v1455_v22 = vrot.slane %v985_v21, 3  ;;  %v1106_v52 = vrot.slane %v985_v21, 2 }
0x12ff   :  { %v1464_v23 = vsel %vm1120_vm7, %v1463_v61, %v1455_v22  ;;  %v1467_v22 = vld [vmem:[#allocation5 + $0x8] sm:$0xff] }
0x136f   :  { %v988_v24 = vpop.permute.xlu0 %987 }
0x1370   :  { %2036 = vmatmul.mubr.msk.f32.vlgmr.msra.gmra.mrb[8].mxu0 %vm141_vm1, %v988_v24 }
0x1371   :  { %2056 = vmatprep.mubr.msk.f32.mxu0 %vm2476_vm0, %v2477_v1  ;;  %2160 = vmatpush3.bf16.msra.mxu0 %v2159_v7 }
0x1372   :  { %2161 = vmatprep.subr.bf16.mxu0 %v2475_v0 }
0x1375   :  { %2163 = vmatpush3.bf16.msra.mxu0 %v2162_v42 }
0x1376   :  { %2070 = vmatprep.subr.mxu0 %v2477_v1 }
0x1443   :  { %v1057_v48 = vpop.f32.mrb[8].mxu0 }
0x1444   :  { %v1058_v26 = vadd.f32 %v2702_v19, %v1057_v48  ;;  %v2037_v27 = vpop.f32.mrb[9].mxu0  ;;  %v1124_v19 = vld [vmem:[#allocation5] sm:$0xff] }
0x1445   :  { %2039 = vmatpush3.xpose.msk.msra.mxu1 %vm141_vm1, %v1124_v19 }
0x1446   :  { %1069 = vrot.lane.b32.xlu1 %v1058_v26, %s2478_s28  ;;  %v1061_v28 = vadd.f32 %v1058_v26, %v2727_v49  ;;  %2043 = vmatprep.subr.mxu1 %v2477_v1 }
0x1448   :  { %v1853_v29 = vmul.f32 -1.442695, %v1061_v28  ;;  %v2906_v28 = vld [vmem:[%s2972_s9] ss:$0 sm:$0xff]  ;;  %s2481_s9 = smov [#allocation14]  }
0x1449   :  { %s1798_s14 = sshll.u32 %s2481_s9, 4  ;;  %s1799_s14 = int_to_ptr.vmem [resolvable:$true] %s1798_s14 }
0x144a   :  { %2243 = vpow2.f32 %v1853_v29  ;;  %s2389_s22 = scalar_lea.vmem %s1799_s14, 32  ;;  %p2394_p7 = scmp.lt.s32.totalorder %s1799_s14, %s1799_s14 }
0x144b   :  { %p2390_p6 = scmp.ne.s32.totalorder %s1799_s14, %s2389_s22  ;;  %p2395_p8 = scmp.lt.s32.totalorder %s2389_s22, %s2389_s22 }
0x144d   :  { %p2396_p9 = por %p2395_p8, %p2394_p7 }
0x144f   :  { %p2397_p10 = pnand %p2396_p9, %p2390_p6 }
0x1454   :  { %v2244_v30 = vpop.eup %2243 }
0x1455   :  { %v1065_v31 = vadd.f32 1.0, %v2244_v30 }
0x1457   :  { %2245 = vrcp.f32 %v1065_v31 }
0x1461   :  { %v2246_v32 = vpop.eup %2245 }
0x1462   :  { %v1079_v45 = vsub.f32 1.0, %v2246_v32  ;;  %v1085_v51 = vmul.f32 %v2246_v32, %v985_v21  ;;  %v2168_v21 = vpack.c.bf16 %v1090_v20, %v1089_v18 }
0x14b8   :  { %v1070_v33 = vpop.permute.xlu1 %1069 }
0x14b9   :  { %v1072_v34 = vmul.f32 %v2246_v32, %v1070_v33 }
0x14bb   :  { %1074 = vrot.lane.b32.xlu0 %v1072_v34, %s2478_s28 }
0x152d   :  { %v1075_v36 = vpop.permute.xlu0 %1074 }
0x152e   :  { %v1077_v37 = vadd.f32 %v1075_v36, %v2727_v49  ;;  %v1111_v49 = vsel %vm226_vm2, %v2732_v3, %v1096_v38 }
0x152f   :  { %v1113_v14 = vsel %vm1112_vm3, %v1111_v49, %v1098_v39 }
0x1530   :  { %2247 = vtanh.f32 %v1077_v37  ;;  %v1115_v25 = vsel %vm1114_vm4, %v1113_v14, %v1100_v40 }
0x1531   :  { %v1117_v50 = vsel %vm1116_vm5, %v1115_v25, %v1102_v46 }
0x1532   :  { %v1119_v35 = vsel %vm1118_vm6, %v1117_v50, %v1104_v47 }
0x1533   :  { %v1121_v54 = vsel %vm1120_vm7, %v1119_v35, %v1106_v52 }
0x153a   :  { %v2248_v43 = vpop.eup %2247 }
0x153b   :  { %1081 = vrot.lane.b32.xlu1 %v2248_v43, %s2479_s5 }
0x15ad   :  { %v1082_v9 = vpop.permute.xlu1 %1081 }
0x15ae   :  { %v1084_v41 = vmul.f32 %v1082_v9, %v1079_v45 }
0x15b0   :  { %v2866_v53 = vadd.f32 %v1085_v51, %v1084_v41 }
0x15b2   :  { %v1109_v10 = vrot.slane %v2866_v53, 1  ;;  %v1457_v3 = vrot.slane %v2866_v53, 2 }
0x15b4   :  { %v1123_v55 = vsel %vm1122_vm8, %v1121_v54, %v1109_v10  ;;  %v1465_v56 = vsel %vm1122_vm8, %v1464_v23, %v1457_v3 }
0x15b5   :  { %1126 = vrot.lane.b32.xlu0 %v1123_v55, %s2479_s5 }
0x1627   :  { %v1127_v57 = vpop.permute.xlu0 %1126 }
0x1628   :  { %2041 = vmatmul.mubr.msk.f32.vlgmr.msra.gmra.mrb[8].mxu1 %vm141_vm1, %v1127_v57 }
0x1629   :  { %2044 = vmatpush3.msra.mxu1 %v1124_v19  ;;  %2045 = vmatprep.mubr.msk.f32.mxu1 %vm2476_vm0, %v2477_v1 }
0x162a   :  { %2164 = vmatprep.subr.bf16.mxu1 %v2475_v0 }
0x16fb   :  { %v1199_v58 = vpop.f32.mrb[8].mxu1 }
0x16fc   :  { %v2042_v59 = vpop.f32.mrb[9].mxu1  ;;  %v1204_v60 = vsel %vm1203_vm9, %v1199_v58, -inf }
0x16fd   :  { %1205 = vmax.xlane.f32.xlu1 %v1204_v60 }
0x178a   :  { %v1206_v61 = vpop.xlane.xlu1 %1205 }
0x178b   :  { %v1207_v44 = vsub.f32 %v1199_v58, %v1206_v61 }
0x178d   :  { %v1208_v62 = vmul.f32 1.442695, %v1207_v44 }
0x178f   :  { %2249 = vpow2.f32 %v1208_v62 }
0x1799   :  { %v2250_v63 = vpop.eup %2249 }
0x179a   :  { %v1210_v2 = vsel %vm1203_vm9, %v2250_v63, 0.0 }
0x179b   :  { %1211 = vadd.xlane.f32.xlu0 %v1210_v2 }
0x17b1   :  { %1469 = vrot.lane.b32.xlu0 %v1465_v56, %s2479_s5 }
0x1828   :  { %v1212_v11 = vpop.xlane.xlu0 %1211 }
0x1829   :  { %2251 = vrcp.f32 %v1212_v11 }
0x182c   :  { %v1470_v48 = vpop.permute.xlu0 %1469 }
0x1833   :  { %v2252_v15 = vpop.eup %2251 }
0x1834   :  { %v1214_v17 = vmul.f32 %v2252_v15, %v2250_v63 }
0x1836   :  { %1215 = vst.msk [vmem:[#allocation16] sm:$0xff] %vm1203_vm9, %v1214_v17  ;;  %2046 = vmatmul.mubr.msk.f32.vlgmr.msra.gmra.mrb[10].mxu1 %vm1203_vm9, %v1214_v17 }
0x1837   :  { %2166 = vmatpush3.bf16.msra.mxu1 %v2165_v16  ;;  %2067 = vmatprep.mubr.msk.f32.mxu1 %vm2476_vm0, %v2477_v1 }
0x1838   :  { %2167 = vmatprep.subr.bf16.mxu1 %v2475_v0 }
0x183b   :  { %2169 = vmatpush3.bf16.msra.mxu1 %v2168_v21 }
0x183c   :  { %2075 = vmatprep.subr.mxu1 %v2477_v1 }
0x183e   :  { %2068 = vmatmul.mubr.msk.f32.vlgmr.msra.gmra.mrb[12].mxu1 %vm141_vm1, %v1127_v57 }
0x183f   :  { %2077 = vmatprep.mubr.msk.f32.mxu1 %vm2476_vm0, %v2477_v1  ;;  %2076 = vmatpush3.msra.mxu1 %v1467_v22 }
0x1840   :  { %2176 = vmatprep.subr.bf16.mxu1 %v2475_v0 }
0x1909   :  { %v1285_v23 = vpop.f32.mrb[10].mxu1 }
0x190a   :  { %v2047_v24 = vpop.f32.mrb[11].mxu1  ;;  %2057 = vmatmul.mubr.msk.f32.vlgmr.msra.gmra.mrb[10].mxu0 %vm141_vm1, %v1285_v23 }
0x190b   :  { %2071 = vmatpush3.xpose.msk.msra.mxu0 %vm141_vm1, %v1467_v22  ;;  %2072 = vmatprep.mubr.msk.f32.mxu0 %vm2476_vm0, %v2477_v1 }
0x190c   :  { %2170 = vmatprep.subr.bf16.mxu0 %v2475_v0 }
0x190e   :  { %2073 = vmatmul.mubr.msk.f32.vlgmr.msra.gmra.mrb[12].mxu0 %vm141_vm1, %v1470_v48 }
0x190f   :  { %2172 = vmatpush3.bf16.msra.mxu0 %v2159_v7  ;;  %2088 = vmatprep.mubr.msk.f32.mxu0 %vm2476_vm0, %v2477_v1 }
0x1910   :  { %2173 = vmatprep.subr.bf16.mxu0 %v2475_v0 }
0x1911   :  { %v1428_v26 = vpop.f32.mrb[12].mxu1 }
0x1912   :  { %v2069_v27 = vpop.f32.mrb[13].mxu1 }
0x1913   :  { %2175 = vmatpush3.bf16.msra.mxu0 %v2162_v42 }
0x19dd   :  { %v1358_v29 = vpop.f32.mrb[10].mxu0 }
0x19de   :  { %v1429_v30 = vadd.f32 %v1428_v26, %v1358_v29  ;;  %v2058_v31 = vpop.f32.mrb[11].mxu0 }
0x19e0   :  { %v1438_v32 = vadd.f32 %v2906_v28, %v1429_v30 }
0x19e1   :  { %v1542_v33 = vpop.f32.mrb[12].mxu0 }
0x19e2   :  { %1439 = vst [vmem:[#allocation13] sm:$0xff] %v1438_v32  ;;  %v2074_v34 = vpop.f32.mrb[13].mxu0  ;;  %v1546_v36 = vsel %vm1203_vm9, %v1542_v33, -inf }
0x19e3   :  { %1547 = vmax.xlane.f32.xlu1 %v1546_v36 }
0x1a70   :  { %v1548_v37 = vpop.xlane.xlu1 %1547 }
0x1a71   :  { %v1549_v19 = vsub.f32 %v1542_v33, %v1548_v37 }
0x1a73   :  { %v1550_v43 = vmul.f32 1.442695, %v1549_v19 }
0x1a75   :  { %2253 = vpow2.f32 %v1550_v43 }
0x1a7f   :  { %v2254_v38 = vpop.eup %2253 }
0x1a80   :  { %v1552_v39 = vsel %vm1203_vm9, %v2254_v38, 0.0 }
0x1a81   :  { %1553 = vadd.xlane.f32.xlu1 %v1552_v39 }
0x1a92   :  { %1440 = vrot.lane.b32.xlu1 %v2866_v53, %s2479_s5 }
0x1b0e   :  { %v1554_v40 = vpop.xlane.xlu1 %1553 }
0x1b0f   :  { %2255 = vrcp.f32 %v1554_v40 }
0x1b12   :  { %v1441_v45 = vpop.permute.xlu1 %1440 }
0x1b13   :  { %1444 = vst.msk [vmem:[#allocation14] sm:$0x1] %vm1443_vm10, %v1441_v45 }
0x1b14   :  { %1780 = vst.msk [vmem:[#allocation14] sm:$0x2] %vm1779_vm11, %v1441_v45 }
0x1b19   :  { %v2256_v46 = vpop.eup %2255 }
0x1b1a   :  { %v1556_v9 = vmul.f32 %v2256_v46, %v2254_v38 }
0x1b1c   :  { %1558 = vst.msk [vmem:[#allocation16 + $0x8] sm:$0xff] %vm1203_vm9, %v1556_v9  ;;  %2078 = vmatmul.mubr.msk.f32.vlgmr.msra.gmra.mrb[14].mxu1 %vm1203_vm9, %v1556_v9 }
0x1b1d   :  { %2178 = vmatpush3.bf16.msra.mxu1 %v2165_v16  ;;  %2099 = vmatprep.mubr.msk.f32.mxu1 %vm2476_vm0, %v2477_v1 }
0x1b1e   :  { %2179 = vmatprep.subr.bf16.mxu1 %v2475_v0 }
0x1b21   :  { %2181 = vmatpush3.bf16.msra.mxu1 %v2168_v21 }
0x1b24   :  { %2100 = vmatmul.mubr.msk.f32.vlgmr.msra.gmra.mrb[16].mxu1 %vm141_vm1, %v1470_v48 }
0x1bef   :  { %v1628_v49 = vpop.f32.mrb[14].mxu1 }
0x1bf0   :  { %v2079_v47 = vpop.f32.mrb[15].mxu1  ;;  %2089 = vmatmul.mubr.msk.f32.vlgmr.msra.gmra.mrb[14].mxu0 %vm141_vm1, %v1628_v49 }
0x1bf7   :  { %v1771_v51 = vpop.f32.mrb[16].mxu1 }
0x1bf8   :  { %v2101_v41 = vpop.f32.mrb[17].mxu1 }
0x1bf9   :  { %2400 = shalt.err (!%p2397_p10)
}
0x1bfa   :  { %s2401_s17 = scalar_lea.hbm %s2974_s11, 32 }
0x1bfb   :  { %p2402_p11 = scmp.ne.s32.totalorder %s2974_s11, %s2401_s17  ;;  %p2405_p12 = scmp.lt.u32.totalorder %s2401_s17, %s2974_s11 }
0x1bfd   :  { %p2407_p13 = pnand %p2405_p12, %p2402_p11 }
0x1bff   :  { %2410 = shalt.err (!%p2407_p13)
}
0x1c00   :  { %s2482_s21 = smov 16   ;;  %s2483_s7 = smov 1  }
0x1c01   :  { %1804 = dma.vmem_to_hbm [thread:$0]  %s1799_s14, 32, %s2974_s11, [#allocation15], %s2482_s21, %s2482_s21, %s2483_s7  }
0x1c02   :  { %s2484_s23 = smov [#allocation16]  }
0x1c03   :  { %s1810_s25 = sshll.u32 %s2484_s23, 4  ;;  %s1811_s25 = int_to_ptr.vmem [resolvable:$true] %s1810_s25 }
0x1c04   :  { %s2411_s4 = scalar_lea.vmem %s1811_s25, 256  ;;  %p2416_p1 = scmp.lt.s32.totalorder %s1811_s25, %s1811_s25 }
0x1c05   :  { %p2412_p0 = scmp.ne.s32.totalorder %s1811_s25, %s2411_s4  ;;  %p2417_p2 = scmp.lt.s32.totalorder %s2411_s4, %s2411_s4 }
0x1c07   :  { %p2418_p3 = por %p2417_p2, %p2416_p1 }
0x1c09   :  { %p2419_p4 = pnand %p2418_p3, %p2412_p0 }
0x1c0b   :  { %2422 = shalt.err (!%p2419_p4)
}
0x1c0c   :  { %s2423_s26 = scalar_lea.hbm %s2975_s12, 256 }
0x1c0d   :  { %p2424_p5 = scmp.ne.s32.totalorder %s2975_s12, %s2423_s26  ;;  %p2427_p6 = scmp.lt.u32.totalorder %s2423_s26, %s2975_s12 }
0x1c0f   :  { %p2429_p7 = pnand %p2427_p6, %p2424_p5 }
0x1c11   :  { %2432 = shalt.err (!%p2429_p7)
}
0x1c12   :  { %1816 = dma.vmem_to_hbm [thread:$0]  %s1811_s25, 256, %s2975_s12, [#allocation15], %s2469_s15, %s2469_s15, %s2470_s16  }
0x1c13   :  { %s2485_s3 = smov [#allocation13]  }
0x1c14   :  { %s1786_s9 = sshll.u32 %s2485_s3, 4  ;;  %s1787_s9 = int_to_ptr.vmem [resolvable:$true] %s1786_s9 }
0x1c15   :  { %s2433_s14 = scalar_lea.vmem %s1787_s9, 256  ;;  %p2438_p9 = scmp.lt.s32.totalorder %s1787_s9, %s1787_s9 }
0x1c16   :  { %p2434_p8 = scmp.ne.s32.totalorder %s1787_s9, %s2433_s14  ;;  %p2439_p10 = scmp.lt.s32.totalorder %s2433_s14, %s2433_s14 }
0x1c18   :  { %p2440_p11 = por %p2439_p10, %p2438_p9 }
0x1c1a   :  { %p2441_p12 = pnand %p2440_p11, %p2434_p8 }
0x1cc3   :  { %v1701_v0 = vpop.f32.mrb[14].mxu0 }
0x1cc4   :  { %v1772_v1 = vadd.f32 %v1771_v51, %v1701_v0  ;;  %v2090_v52 = vpop.f32.mrb[15].mxu0 }
0x1cc6   :  { %v1775_v14 = vadd.f32 %v2906_v28, %v1772_v1 }
0x1cc8   :  { %1777 = vst [vmem:[#allocation13 + $0x8] sm:$0xff] %v1775_v14 }
0x1cc9   :  { %2444 = shalt.err (!%p2441_p12)
}
0x1cca   :  { %s2445_s12 = scalar_lea.hbm %s2973_s10, 256 }
0x1ccb   :  { %p2446_p13 = scmp.ne.s32.totalorder %s2973_s10, %s2445_s12  ;;  %p2449_p0 = scmp.lt.u32.totalorder %s2445_s12, %s2973_s10 }
0x1ccd   :  { %p2451_p1 = pnand %p2449_p0, %p2446_p13 }
0x1ccf   :  { %2454 = shalt.err (!%p2451_p1)
}
0x1cd0   :  { %1792 = dma.vmem_to_hbm [thread:$0]  %s1787_s9, 256, %s2973_s10, [#allocation4], %s2469_s15, %s2469_s15, %s2470_s16  }
0x1cd1   :  { %2463 = dma.done.wait [#allocation4], 256  }
0x1cd2   :  { %2464 = vsyncadd [#allocation4], 4294967040 }
0x1cd3   :  { %2465 = dma.done.wait [#allocation15], 288  }
0x1cd4   :  { %2466 = vsyncadd [#allocation15], 4294967008 }
0x1cd5   :  { %1826 = vsyncpa [#allocation3], 1 }
0x1cd6   :  { %1827 = vsyncpa [#allocation6], 1 }
0x1cd7   :  { %1828 = vsyncpa [#allocation9], 1 }
0x1cd8   :  { %1829 = vsyncpa [#allocation12], 1 }
0x1cd9   :  { %1830 = vsyncpa [#allocation4], 1 }
0x1cda   :  { %1831 = vsyncpa [#allocation15], 1 }

</bundles_post_ra>
